<compile_context>
chip_gen: v7x
topology: tpu7x:2x2x1
jax: 0.10.0
libtpu: 0.0.40
codegen_flags: <defaults>
</compile_context>

<pallas_src>
import functools

import jax
import jax.numpy as jnp
from jax.experimental import pallas as pl
from jax.experimental.pallas import tpu as pltpu

H_PAD = 128   # lane-aligned padded hidden size
OUT_PAD = 128  # lane-dense padded output size
B_TILE = 8    # one sublane tile of batch rows per grid step


def cond_lstm_kernel(seq_ref, aux_ref,
                     w_aux_ref, b_aux_ref,
                     w_ih_ref, w_hh_ref, b_gates_ref,
                     w_out_ref, b_out_ref,
                     out_ref):
    seq = seq_ref[...]                       # (Bt, T)
    aux = aux_ref[...]                       # (Bt, A)
    Bt, T = seq.shape
    Hp = w_hh_ref.shape[0]                   # padded hidden size (128)

    # 1) initial hidden state from the auxiliary linear layer (padded lanes = 0)
    h = jnp.dot(aux, w_aux_ref[...],
                preferred_element_type=jnp.float32) + b_aux_ref[...]   # (Bt, Hp)
    c = jnp.zeros_like(h)

    w_hh = w_hh_ref[...]                     # (Hp, 4Hp)
    # Hoist broadcasts out of the recurrence (JAX does not CSE broadcast_in_dim).
    w_ih_b = jnp.broadcast_to(w_ih_ref[...], (Bt, 4 * Hp))   # (Bt, 4Hp)
    b_g_b = jnp.broadcast_to(b_gates_ref[...], (Bt, 4 * Hp))  # (Bt, 4Hp)

    # 2) LSTM recurrence. T is small and static -> static unroll keeps full
    #    LLO scheduler visibility.
    # TODO(synk): for long sequences switch to lax.fori_loop carrying (h, c)
    #             with unroll=4-8 to bound code size / vreg live ranges.
    for t in range(T):
        x_t = seq[:, t:t + 1]                                           # (Bt, 1)
        # Input contribution is a rank-1 outer product -> cheap VPU multiply,
        # not an MXU matmul.
        gates = (x_t * w_ih_b
                 + jnp.dot(h, w_hh, preferred_element_type=jnp.float32)
                 + b_g_b)                                               # (Bt, 4Hp)
        # Lane-aligned 128-wide gate blocks: zero-cost static slices.
        i_g = jax.nn.sigmoid(gates[:, 0 * Hp:1 * Hp])
        f_g = jax.nn.sigmoid(gates[:, 1 * Hp:2 * Hp])
        g_g = jnp.tanh(gates[:, 2 * Hp:3 * Hp])
        o_g = jax.nn.sigmoid(gates[:, 3 * Hp:4 * Hp])
        c = f_g * c + i_g * g_g
        h = o_g * jnp.tanh(c)

    # 3) output linear on the final hidden state; lane-dense (padded) store.
    out_ref[...] = (jnp.dot(h, w_out_ref[...],
                            preferred_element_type=jnp.float32)
                    + b_out_ref[...])                                   # (Bt, OUT_PAD)


@functools.partial(jax.jit, static_argnames=("out_size",))
def conditional_lstm_forward(seq, aux, params, out_size):
    B, T = seq.shape
    A = aux.shape[1]

    # Pad batch to a full sublane tile.
    B_pad = ((B + B_TILE - 1) // B_TILE) * B_TILE
    seq_p = jnp.zeros((B_pad, T), jnp.float32).at[:B].set(seq)
    aux_p = jnp.zeros((B_pad, A), jnp.float32).at[:B].set(aux)

    def full_spec(shape):
        return pl.BlockSpec(shape, lambda i: (0, 0))

    out_p = pl.pallas_call(
        cond_lstm_kernel,
        out_shape=jax.ShapeDtypeStruct((B_pad, OUT_PAD), jnp.float32),
        grid=(B_pad // B_TILE,),
        in_specs=[
            pl.BlockSpec((B_TILE, T), lambda i: (i, 0)),     # seq tile
            pl.BlockSpec((B_TILE, A), lambda i: (i, 0)),     # aux tile
            full_spec(params["w_aux"].shape),
            full_spec(params["b_aux"].shape),
            full_spec(params["w_ih"].shape),
            full_spec(params["w_hh"].shape),
            full_spec(params["b_gates"].shape),
            full_spec(params["w_out"].shape),
            full_spec(params["b_out"].shape),
        ],
        out_specs=pl.BlockSpec((B_TILE, OUT_PAD), lambda i: (i, 0)),
        compiler_params=pltpu.CompilerParams(
            dimension_semantics=("parallel",)),
    )(seq_p, aux_p,
      params["w_aux"], params["b_aux"],
      params["w_ih"], params["w_hh"], params["b_gates"],
      params["w_out"], params["b_out"])

    return out_p[:B, :out_size]


def init_raw_params(key, input_size, hidden, aux_size, out_size):
    """Deterministic synthetic parameters in PyTorch-native layout."""
    ks = jax.random.split(key, 8)

    def u(k, shape, fan):
        bound = 1.0 / jnp.sqrt(fan)
        return jax.random.uniform(k, shape, jnp.float32, -bound, bound)

    return {
        "w_aux": u(ks[0], (hidden, aux_size), aux_size),       # (H, A)
        "b_aux": u(ks[1], (hidden,), aux_size),                # (H,)
        "w_ih": u(ks[2], (4 * hidden, input_size), hidden),    # (4H, in)
        "w_hh": u(ks[3], (4 * hidden, hidden), hidden),        # (4H, H)
        "b_ih": u(ks[4], (4 * hidden,), hidden),               # (4H,)
        "b_hh": u(ks[5], (4 * hidden,), hidden),               # (4H,)
        "w_out": u(ks[6], (out_size, hidden), hidden),         # (out, H)
        "b_out": u(ks[7], (out_size,), hidden),                # (out,)
    }


def pad_params_for_kernel(raw, h_pad=H_PAD, out_pad=OUT_PAD):
    """Transpose + lane-pad weights; each gate gets its own 128-wide block."""
    H = raw["w_hh"].shape[1]
    A = raw["w_aux"].shape[1]
    OUT = raw["w_out"].shape[0]
    assert H <= h_pad and OUT <= out_pad

    w_aux = jnp.zeros((A, h_pad), jnp.float32).at[:, :H].set(raw["w_aux"].T)
    b_aux = jnp.zeros((1, h_pad), jnp.float32).at[0, :H].set(raw["b_aux"])

    w_ih_t = raw["w_ih"].T          # (1, 4H)
    w_hh_t = raw["w_hh"].T          # (H, 4H)
    b_g = raw["b_ih"] + raw["b_hh"]  # (4H,)

    w_ih = jnp.zeros((1, 4 * h_pad), jnp.float32)
    w_hh = jnp.zeros((h_pad, 4 * h_pad), jnp.float32)
    b_gates = jnp.zeros((1, 4 * h_pad), jnp.float32)
    for k in range(4):   # gate order [i, f, g, o], each in its own 128-lane block
        w_ih = w_ih.at[:, k * h_pad:k * h_pad + H].set(w_ih_t[:, k * H:(k + 1) * H])
        w_hh = w_hh.at[:H, k * h_pad:k * h_pad + H].set(w_hh_t[:, k * H:(k + 1) * H])
        b_gates = b_gates.at[0, k * h_pad:k * h_pad + H].set(b_g[k * H:(k + 1) * H])

    w_out = jnp.zeros((h_pad, out_pad), jnp.float32).at[:H, :OUT].set(raw["w_out"].T)
    b_out = jnp.zeros((1, out_pad), jnp.float32).at[0, :OUT].set(raw["b_out"])

    return {"w_aux": w_aux, "b_aux": b_aux,
            "w_ih": w_ih, "w_hh": w_hh, "b_gates": b_gates,
            "w_out": w_out, "b_out": b_out}


def reference_forward(seq, aux, raw):
    """Pure-JAX reference matching the PyTorch module semantics (unpadded)."""
    H = raw["w_hh"].shape[1]
    h = aux @ raw["w_aux"].T + raw["b_aux"]
    c = jnp.zeros_like(h)
    b_g = raw["b_ih"] + raw["b_hh"]
    for t in range(seq.shape[1]):
        x_t = seq[:, t:t + 1]
        gates = x_t @ raw["w_ih"].T + h @ raw["w_hh"].T + b_g
        i_g = jax.nn.sigmoid(gates[:, 0 * H:1 * H])
        f_g = jax.nn.sigmoid(gates[:, 1 * H:2 * H])
        g_g = jnp.tanh(gates[:, 2 * H:3 * H])
        o_g = jax.nn.sigmoid(gates[:, 3 * H:4 * H])
        c = f_g * c + i_g * g_g
        h = o_g * jnp.tanh(c)
    return h @ raw["w_out"].T + raw["b_out"]


if __name__ == "__main__":
    B, T = 2, 8               # batch, sequence length
    INPUT_SIZE = 1            # per-timestep feature size (module default)
    HIDDEN = 32               # small hidden size (module default is 100)
    AUX = 31                  # aux one-hot size (module default)
    OUT = 1                   # output size (module default)

    key = jax.random.PRNGKey(0)
    k_seq, k_aux, k_par = jax.random.split(key, 3)
    input_seq = jax.random.normal(k_seq, (B, T), jnp.float32)
    aux_data = jax.random.normal(k_aux, (B, AUX), jnp.float32)

    raw_params = init_raw_params(k_par, INPUT_SIZE, HIDDEN, AUX, OUT)
    kernel_params = pad_params_for_kernel(raw_params)

    preds = conditional_lstm_forward(input_seq, aux_data, kernel_params, OUT)
    preds = jax.block_until_ready(preds)

    ref = reference_forward(input_seq, aux_data, raw_params)
    assert preds.shape == (B, OUT)
    assert jnp.allclose(preds, ref, atol=1e-5, rtol=1e-5), (preds, ref)

    print("KERNEL_OK")
</pallas_src>

<mosaic_0001>
module attributes {stable_mosaic.version = 11 : i64} {
  func.func @cond_lstm_kernel(%arg0: i32, %arg1: memref<8x8xf32, #tpu.memory_space<vmem>>, %arg2: memref<8x31xf32, #tpu.memory_space<vmem>>, %arg3: memref<31x128xf32, #tpu.memory_space<vmem>>, %arg4: memref<1x128xf32, #tpu.memory_space<vmem>>, %arg5: memref<1x512xf32, #tpu.memory_space<vmem>>, %arg6: memref<128x512xf32, #tpu.memory_space<vmem>>, %arg7: memref<1x512xf32, #tpu.memory_space<vmem>>, %arg8: memref<128x128xf32, #tpu.memory_space<vmem>>, %arg9: memref<1x128xf32, #tpu.memory_space<vmem>>, %arg10: memref<8x128xf32, #tpu.memory_space<vmem>>) attributes {dimension_semantics = [#tpu.dimension_semantics<parallel>], iteration_bounds = array<i64: 1>, scalar_prefetch = 0 : i64, scratch_operands = 0 : i64, tpu.core_type = #tpu.core_type<tc>, window_params = [{transform_indices = @transform_0, window_bounds = array<i64: 8, 8>}, {transform_indices = @transform_1, window_bounds = array<i64: 8, 31>}, {pipeline_mode = #tpu.pipeline_mode<synchronous>, transform_indices = @transform_2, window_bounds = array<i64: 31, 128>}, {pipeline_mode = #tpu.pipeline_mode<synchronous>, transform_indices = @transform_3, window_bounds = array<i64: 1, 128>}, {pipeline_mode = #tpu.pipeline_mode<synchronous>, transform_indices = @transform_4, window_bounds = array<i64: 1, 512>}, {pipeline_mode = #tpu.pipeline_mode<synchronous>, transform_indices = @transform_5, window_bounds = array<i64: 128, 512>}, {pipeline_mode = #tpu.pipeline_mode<synchronous>, transform_indices = @transform_6, window_bounds = array<i64: 1, 512>}, {pipeline_mode = #tpu.pipeline_mode<synchronous>, transform_indices = @transform_7, window_bounds = array<i64: 128, 128>}, {pipeline_mode = #tpu.pipeline_mode<synchronous>, transform_indices = @transform_8, window_bounds = array<i64: 1, 128>}, {transform_indices = @transform_9, window_bounds = array<i64: 8, 128>}]} {
    %c0 = arith.constant 0 : index
    %c0_0 = arith.constant 0 : index
    %0 = vector.load %arg1[%c0, %c0_0] : memref<8x8xf32, #tpu.memory_space<vmem>>, vector<8x8xf32>
    %c0_1 = arith.constant 0 : index
    %c0_2 = arith.constant 0 : index
    %1 = vector.load %arg2[%c0_1, %c0_2] : memref<8x31xf32, #tpu.memory_space<vmem>>, vector<8x31xf32>
    %c0_3 = arith.constant 0 : index
    %c0_4 = arith.constant 0 : index
    %2 = vector.load %arg3[%c0_3, %c0_4] : memref<31x128xf32, #tpu.memory_space<vmem>>, vector<31x128xf32>
    %cst = arith.constant dense<0.000000e+00> : vector<8x128xf32>
    %3 = tpu.matmul %1, %2, %cst {dimension_numbers = #tpu.dot_dimension_numbers<[1], [0], [0], [1], [0, 0, 1, 1], [], []>} : vector<8x31xf32>, vector<31x128xf32>, vector<8x128xf32> -> vector<8x128xf32>
    %c0_5 = arith.constant 0 : index
    %c0_6 = arith.constant 0 : index
    %4 = vector.load %arg4[%c0_5, %c0_6] : memref<1x128xf32, #tpu.memory_space<vmem>>, vector<1x128xf32>
    %5 = vector.broadcast %4 : vector<1x128xf32> to vector<8x128xf32>
    %6 = arith.addf %3, %5 : vector<8x128xf32>
    %cst_7 = arith.constant 0.000000e+00 : f32
    %7 = vector.broadcast %cst_7 : f32 to vector<8x128xf32>
    %c0_8 = arith.constant 0 : index
    %c0_9 = arith.constant 0 : index
    %8 = vector.load %arg6[%c0_8, %c0_9] : memref<128x512xf32, #tpu.memory_space<vmem>>, vector<128x512xf32>
    %c0_10 = arith.constant 0 : index
    %c0_11 = arith.constant 0 : index
    %9 = vector.load %arg5[%c0_10, %c0_11] : memref<1x512xf32, #tpu.memory_space<vmem>>, vector<1x512xf32>
    %10 = vector.shape_cast %9 : vector<1x512xf32> to vector<1x512xf32>
    %11 = vector.broadcast %10 : vector<1x512xf32> to vector<8x512xf32>
    %c0_12 = arith.constant 0 : index
    %c0_13 = arith.constant 0 : index
    %12 = vector.load %arg7[%c0_12, %c0_13] : memref<1x512xf32, #tpu.memory_space<vmem>>, vector<1x512xf32>
    %13 = vector.shape_cast %12 : vector<1x512xf32> to vector<1x512xf32>
    %14 = vector.broadcast %13 : vector<1x512xf32> to vector<8x512xf32>
    %15 = vector.extract_strided_slice %0 {offsets = [0, 0], sizes = [8, 1], strides = [1, 1]} : vector<8x8xf32> to vector<8x1xf32>
    %16 = vector.broadcast %15 : vector<8x1xf32> to vector<8x512xf32>
    %17 = arith.mulf %16, %11 : vector<8x512xf32>
    %cst_14 = arith.constant dense<0.000000e+00> : vector<8x512xf32>
    %18 = tpu.matmul %6, %8, %cst_14 {dimension_numbers = #tpu.dot_dimension_numbers<[1], [0], [0], [1], [0, 0, 1, 1], [], []>} : vector<8x128xf32>, vector<128x512xf32>, vector<8x512xf32> -> vector<8x512xf32>
    %19 = arith.addf %17, %18 : vector<8x512xf32>
    %20 = arith.addf %19, %14 : vector<8x512xf32>
    %21 = vector.extract_strided_slice %20 {offsets = [0, 0], sizes = [8, 128], strides = [1, 1]} : vector<8x512xf32> to vector<8x128xf32>
    %22 = arith.negf %21 : vector<8x128xf32>
    %23 = math.exp %22 : vector<8x128xf32>
    %cst_15 = arith.constant 1.000000e+00 : f32
    %24 = vector.broadcast %cst_15 : f32 to vector<8x128xf32>
    %25 = arith.addf %24, %23 : vector<8x128xf32>
    %26 = arith.divf %24, %25 : vector<8x128xf32>
    %27 = vector.extract_strided_slice %20 {offsets = [0, 128], sizes = [8, 128], strides = [1, 1]} : vector<8x512xf32> to vector<8x128xf32>
    %28 = arith.negf %27 : vector<8x128xf32>
    %29 = math.exp %28 : vector<8x128xf32>
    %cst_16 = arith.constant 1.000000e+00 : f32
    %30 = vector.broadcast %cst_16 : f32 to vector<8x128xf32>
    %31 = arith.addf %30, %29 : vector<8x128xf32>
    %32 = arith.divf %30, %31 : vector<8x128xf32>
    %33 = vector.extract_strided_slice %20 {offsets = [0, 256], sizes = [8, 128], strides = [1, 1]} : vector<8x512xf32> to vector<8x128xf32>
    %34 = math.tanh %33 : vector<8x128xf32>
    %35 = vector.extract_strided_slice %20 {offsets = [0, 384], sizes = [8, 128], strides = [1, 1]} : vector<8x512xf32> to vector<8x128xf32>
    %36 = arith.negf %35 : vector<8x128xf32>
    %37 = math.exp %36 : vector<8x128xf32>
    %cst_17 = arith.constant 1.000000e+00 : f32
    %38 = vector.broadcast %cst_17 : f32 to vector<8x128xf32>
    %39 = arith.addf %38, %37 : vector<8x128xf32>
    %40 = arith.divf %38, %39 : vector<8x128xf32>
    %41 = arith.mulf %32, %7 : vector<8x128xf32>
    %42 = arith.mulf %26, %34 : vector<8x128xf32>
    %43 = arith.addf %41, %42 : vector<8x128xf32>
    %44 = math.tanh %43 : vector<8x128xf32>
    %45 = arith.mulf %40, %44 : vector<8x128xf32>
    %46 = vector.extract_strided_slice %0 {offsets = [0, 1], sizes = [8, 1], strides = [1, 1]} : vector<8x8xf32> to vector<8x1xf32>
    %47 = vector.broadcast %46 : vector<8x1xf32> to vector<8x512xf32>
    %48 = arith.mulf %47, %11 : vector<8x512xf32>
    %cst_18 = arith.constant dense<0.000000e+00> : vector<8x512xf32>
    %49 = tpu.matmul %45, %8, %cst_18 {dimension_numbers = #tpu.dot_dimension_numbers<[1], [0], [0], [1], [0, 0, 1, 1], [], []>} : vector<8x128xf32>, vector<128x512xf32>, vector<8x512xf32> -> vector<8x512xf32>
    %50 = arith.addf %48, %49 : vector<8x512xf32>
    %51 = arith.addf %50, %14 : vector<8x512xf32>
    %52 = vector.extract_strided_slice %51 {offsets = [0, 0], sizes = [8, 128], strides = [1, 1]} : vector<8x512xf32> to vector<8x128xf32>
    %53 = arith.negf %52 : vector<8x128xf32>
    %54 = math.exp %53 : vector<8x128xf32>
    %cst_19 = arith.constant 1.000000e+00 : f32
    %55 = vector.broadcast %cst_19 : f32 to vector<8x128xf32>
    %56 = arith.addf %55, %54 : vector<8x128xf32>
    %57 = arith.divf %55, %56 : vector<8x128xf32>
    %58 = vector.extract_strided_slice %51 {offsets = [0, 128], sizes = [8, 128], strides = [1, 1]} : vector<8x512xf32> to vector<8x128xf32>
    %59 = arith.negf %58 : vector<8x128xf32>
    %60 = math.exp %59 : vector<8x128xf32>
    %cst_20 = arith.constant 1.000000e+00 : f32
    %61 = vector.broadcast %cst_20 : f32 to vector<8x128xf32>
    %62 = arith.addf %61, %60 : vector<8x128xf32>
    %63 = arith.divf %61, %62 : vector<8x128xf32>
    %64 = vector.extract_strided_slice %51 {offsets = [0, 256], sizes = [8, 128], strides = [1, 1]} : vector<8x512xf32> to vector<8x128xf32>
    %65 = math.tanh %64 : vector<8x128xf32>
    %66 = vector.extract_strided_slice %51 {offsets = [0, 384], sizes = [8, 128], strides = [1, 1]} : vector<8x512xf32> to vector<8x128xf32>
    %67 = arith.negf %66 : vector<8x128xf32>
    %68 = math.exp %67 : vector<8x128xf32>
    %cst_21 = arith.constant 1.000000e+00 : f32
    %69 = vector.broadcast %cst_21 : f32 to vector<8x128xf32>
    %70 = arith.addf %69, %68 : vector<8x128xf32>
    %71 = arith.divf %69, %70 : vector<8x128xf32>
    %72 = arith.mulf %63, %43 : vector<8x128xf32>
    %73 = arith.mulf %57, %65 : vector<8x128xf32>
    %74 = arith.addf %72, %73 : vector<8x128xf32>
    %75 = math.tanh %74 : vector<8x128xf32>
    %76 = arith.mulf %71, %75 : vector<8x128xf32>
    %77 = vector.extract_strided_slice %0 {offsets = [0, 2], sizes = [8, 1], strides = [1, 1]} : vector<8x8xf32> to vector<8x1xf32>
    %78 = vector.broadcast %77 : vector<8x1xf32> to vector<8x512xf32>
    %79 = arith.mulf %78, %11 : vector<8x512xf32>
    %cst_22 = arith.constant dense<0.000000e+00> : vector<8x512xf32>
    %80 = tpu.matmul %76, %8, %cst_22 {dimension_numbers = #tpu.dot_dimension_numbers<[1], [0], [0], [1], [0, 0, 1, 1], [], []>} : vector<8x128xf32>, vector<128x512xf32>, vector<8x512xf32> -> vector<8x512xf32>
    %81 = arith.addf %79, %80 : vector<8x512xf32>
    %82 = arith.addf %81, %14 : vector<8x512xf32>
    %83 = vector.extract_strided_slice %82 {offsets = [0, 0], sizes = [8, 128], strides = [1, 1]} : vector<8x512xf32> to vector<8x128xf32>
    %84 = arith.negf %83 : vector<8x128xf32>
    %85 = math.exp %84 : vector<8x128xf32>
    %cst_23 = arith.constant 1.000000e+00 : f32
    %86 = vector.broadcast %cst_23 : f32 to vector<8x128xf32>
    %87 = arith.addf %86, %85 : vector<8x128xf32>
    %88 = arith.divf %86, %87 : vector<8x128xf32>
    %89 = vector.extract_strided_slice %82 {offsets = [0, 128], sizes = [8, 128], strides = [1, 1]} : vector<8x512xf32> to vector<8x128xf32>
    %90 = arith.negf %89 : vector<8x128xf32>
    %91 = math.exp %90 : vector<8x128xf32>
    %cst_24 = arith.constant 1.000000e+00 : f32
    %92 = vector.broadcast %cst_24 : f32 to vector<8x128xf32>
    %93 = arith.addf %92, %91 : vector<8x128xf32>
    %94 = arith.divf %92, %93 : vector<8x128xf32>
    %95 = vector.extract_strided_slice %82 {offsets = [0, 256], sizes = [8, 128], strides = [1, 1]} : vector<8x512xf32> to vector<8x128xf32>
    %96 = math.tanh %95 : vector<8x128xf32>
    %97 = vector.extract_strided_slice %82 {offsets = [0, 384], sizes = [8, 128], strides = [1, 1]} : vector<8x512xf32> to vector<8x128xf32>
    %98 = arith.negf %97 : vector<8x128xf32>
    %99 = math.exp %98 : vector<8x128xf32>
    %cst_25 = arith.constant 1.000000e+00 : f32
    %100 = vector.broadcast %cst_25 : f32 to vector<8x128xf32>
    %101 = arith.addf %100, %99 : vector<8x128xf32>
    %102 = arith.divf %100, %101 : vector<8x128xf32>
    %103 = arith.mulf %94, %74 : vector<8x128xf32>
    %104 = arith.mulf %88, %96 : vector<8x128xf32>
    %105 = arith.addf %103, %104 : vector<8x128xf32>
    %106 = math.tanh %105 : vector<8x128xf32>
    %107 = arith.mulf %102, %106 : vector<8x128xf32>
    %108 = vector.extract_strided_slice %0 {offsets = [0, 3], sizes = [8, 1], strides = [1, 1]} : vector<8x8xf32> to vector<8x1xf32>
    %109 = vector.broadcast %108 : vector<8x1xf32> to vector<8x512xf32>
    %110 = arith.mulf %109, %11 : vector<8x512xf32>
    %cst_26 = arith.constant dense<0.000000e+00> : vector<8x512xf32>
    %111 = tpu.matmul %107, %8, %cst_26 {dimension_numbers = #tpu.dot_dimension_numbers<[1], [0], [0], [1], [0, 0, 1, 1], [], []>} : vector<8x128xf32>, vector<128x512xf32>, vector<8x512xf32> -> vector<8x512xf32>
    %112 = arith.addf %110, %111 : vector<8x512xf32>
    %113 = arith.addf %112, %14 : vector<8x512xf32>
    %114 = vector.extract_strided_slice %113 {offsets = [0, 0], sizes = [8, 128], strides = [1, 1]} : vector<8x512xf32> to vector<8x128xf32>
    %115 = arith.negf %114 : vector<8x128xf32>
    %116 = math.exp %115 : vector<8x128xf32>
    %cst_27 = arith.constant 1.000000e+00 : f32
    %117 = vector.broadcast %cst_27 : f32 to vector<8x128xf32>
    %118 = arith.addf %117, %116 : vector<8x128xf32>
    %119 = arith.divf %117, %118 : vector<8x128xf32>
    %120 = vector.extract_strided_slice %113 {offsets = [0, 128], sizes = [8, 128], strides = [1, 1]} : vector<8x512xf32> to vector<8x128xf32>
    %121 = arith.negf %120 : vector<8x128xf32>
    %122 = math.exp %121 : vector<8x128xf32>
    %cst_28 = arith.constant 1.000000e+00 : f32
    %123 = vector.broadcast %cst_28 : f32 to vector<8x128xf32>
    %124 = arith.addf %123, %122 : vector<8x128xf32>
    %125 = arith.divf %123, %124 : vector<8x128xf32>
    %126 = vector.extract_strided_slice %113 {offsets = [0, 256], sizes = [8, 128], strides = [1, 1]} : vector<8x512xf32> to vector<8x128xf32>
    %127 = math.tanh %126 : vector<8x128xf32>
    %128 = vector.extract_strided_slice %113 {offsets = [0, 384], sizes = [8, 128], strides = [1, 1]} : vector<8x512xf32> to vector<8x128xf32>
    %129 = arith.negf %128 : vector<8x128xf32>
    %130 = math.exp %129 : vector<8x128xf32>
    %cst_29 = arith.constant 1.000000e+00 : f32
    %131 = vector.broadcast %cst_29 : f32 to vector<8x128xf32>
    %132 = arith.addf %131, %130 : vector<8x128xf32>
    %133 = arith.divf %131, %132 : vector<8x128xf32>
    %134 = arith.mulf %125, %105 : vector<8x128xf32>
    %135 = arith.mulf %119, %127 : vector<8x128xf32>
    %136 = arith.addf %134, %135 : vector<8x128xf32>
    %137 = math.tanh %136 : vector<8x128xf32>
    %138 = arith.mulf %133, %137 : vector<8x128xf32>
    %139 = vector.extract_strided_slice %0 {offsets = [0, 4], sizes = [8, 1], strides = [1, 1]} : vector<8x8xf32> to vector<8x1xf32>
    %140 = vector.broadcast %139 : vector<8x1xf32> to vector<8x512xf32>
    %141 = arith.mulf %140, %11 : vector<8x512xf32>
    %cst_30 = arith.constant dense<0.000000e+00> : vector<8x512xf32>
    %142 = tpu.matmul %138, %8, %cst_30 {dimension_numbers = #tpu.dot_dimension_numbers<[1], [0], [0], [1], [0, 0, 1, 1], [], []>} : vector<8x128xf32>, vector<128x512xf32>, vector<8x512xf32> -> vector<8x512xf32>
    %143 = arith.addf %141, %142 : vector<8x512xf32>
    %144 = arith.addf %143, %14 : vector<8x512xf32>
    %145 = vector.extract_strided_slice %144 {offsets = [0, 0], sizes = [8, 128], strides = [1, 1]} : vector<8x512xf32> to vector<8x128xf32>
    %146 = arith.negf %145 : vector<8x128xf32>
    %147 = math.exp %146 : vector<8x128xf32>
    %cst_31 = arith.constant 1.000000e+00 : f32
    %148 = vector.broadcast %cst_31 : f32 to vector<8x128xf32>
    %149 = arith.addf %148, %147 : vector<8x128xf32>
    %150 = arith.divf %148, %149 : vector<8x128xf32>
    %151 = vector.extract_strided_slice %144 {offsets = [0, 128], sizes = [8, 128], strides = [1, 1]} : vector<8x512xf32> to vector<8x128xf32>
    %152 = arith.negf %151 : vector<8x128xf32>
    %153 = math.exp %152 : vector<8x128xf32>
    %cst_32 = arith.constant 1.000000e+00 : f32
    %154 = vector.broadcast %cst_32 : f32 to vector<8x128xf32>
    %155 = arith.addf %154, %153 : vector<8x128xf32>
    %156 = arith.divf %154, %155 : vector<8x128xf32>
    %157 = vector.extract_strided_slice %144 {offsets = [0, 256], sizes = [8, 128], strides = [1, 1]} : vector<8x512xf32> to vector<8x128xf32>
    %158 = math.tanh %157 : vector<8x128xf32>
    %159 = vector.extract_strided_slice %144 {offsets = [0, 384], sizes = [8, 128], strides = [1, 1]} : vector<8x512xf32> to vector<8x128xf32>
    %160 = arith.negf %159 : vector<8x128xf32>
    %161 = math.exp %160 : vector<8x128xf32>
    %cst_33 = arith.constant 1.000000e+00 : f32
    %162 = vector.broadcast %cst_33 : f32 to vector<8x128xf32>
    %163 = arith.addf %162, %161 : vector<8x128xf32>
    %164 = arith.divf %162, %163 : vector<8x128xf32>
    %165 = arith.mulf %156, %136 : vector<8x128xf32>
    %166 = arith.mulf %150, %158 : vector<8x128xf32>
    %167 = arith.addf %165, %166 : vector<8x128xf32>
    %168 = math.tanh %167 : vector<8x128xf32>
    %169 = arith.mulf %164, %168 : vector<8x128xf32>
    %170 = vector.extract_strided_slice %0 {offsets = [0, 5], sizes = [8, 1], strides = [1, 1]} : vector<8x8xf32> to vector<8x1xf32>
    %171 = vector.broadcast %170 : vector<8x1xf32> to vector<8x512xf32>
    %172 = arith.mulf %171, %11 : vector<8x512xf32>
    %cst_34 = arith.constant dense<0.000000e+00> : vector<8x512xf32>
    %173 = tpu.matmul %169, %8, %cst_34 {dimension_numbers = #tpu.dot_dimension_numbers<[1], [0], [0], [1], [0, 0, 1, 1], [], []>} : vector<8x128xf32>, vector<128x512xf32>, vector<8x512xf32> -> vector<8x512xf32>
    %174 = arith.addf %172, %173 : vector<8x512xf32>
    %175 = arith.addf %174, %14 : vector<8x512xf32>
    %176 = vector.extract_strided_slice %175 {offsets = [0, 0], sizes = [8, 128], strides = [1, 1]} : vector<8x512xf32> to vector<8x128xf32>
    %177 = arith.negf %176 : vector<8x128xf32>
    %178 = math.exp %177 : vector<8x128xf32>
    %cst_35 = arith.constant 1.000000e+00 : f32
    %179 = vector.broadcast %cst_35 : f32 to vector<8x128xf32>
    %180 = arith.addf %179, %178 : vector<8x128xf32>
    %181 = arith.divf %179, %180 : vector<8x128xf32>
    %182 = vector.extract_strided_slice %175 {offsets = [0, 128], sizes = [8, 128], strides = [1, 1]} : vector<8x512xf32> to vector<8x128xf32>
    %183 = arith.negf %182 : vector<8x128xf32>
    %184 = math.exp %183 : vector<8x128xf32>
    %cst_36 = arith.constant 1.000000e+00 : f32
    %185 = vector.broadcast %cst_36 : f32 to vector<8x128xf32>
    %186 = arith.addf %185, %184 : vector<8x128xf32>
    %187 = arith.divf %185, %186 : vector<8x128xf32>
    %188 = vector.extract_strided_slice %175 {offsets = [0, 256], sizes = [8, 128], strides = [1, 1]} : vector<8x512xf32> to vector<8x128xf32>
    %189 = math.tanh %188 : vector<8x128xf32>
    %190 = vector.extract_strided_slice %175 {offsets = [0, 384], sizes = [8, 128], strides = [1, 1]} : vector<8x512xf32> to vector<8x128xf32>
    %191 = arith.negf %190 : vector<8x128xf32>
    %192 = math.exp %191 : vector<8x128xf32>
    %cst_37 = arith.constant 1.000000e+00 : f32
    %193 = vector.broadcast %cst_37 : f32 to vector<8x128xf32>
    %194 = arith.addf %193, %192 : vector<8x128xf32>
    %195 = arith.divf %193, %194 : vector<8x128xf32>
    %196 = arith.mulf %187, %167 : vector<8x128xf32>
    %197 = arith.mulf %181, %189 : vector<8x128xf32>
    %198 = arith.addf %196, %197 : vector<8x128xf32>
    %199 = math.tanh %198 : vector<8x128xf32>
    %200 = arith.mulf %195, %199 : vector<8x128xf32>
    %201 = vector.extract_strided_slice %0 {offsets = [0, 6], sizes = [8, 1], strides = [1, 1]} : vector<8x8xf32> to vector<8x1xf32>
    %202 = vector.broadcast %201 : vector<8x1xf32> to vector<8x512xf32>
    %203 = arith.mulf %202, %11 : vector<8x512xf32>
    %cst_38 = arith.constant dense<0.000000e+00> : vector<8x512xf32>
    %204 = tpu.matmul %200, %8, %cst_38 {dimension_numbers = #tpu.dot_dimension_numbers<[1], [0], [0], [1], [0, 0, 1, 1], [], []>} : vector<8x128xf32>, vector<128x512xf32>, vector<8x512xf32> -> vector<8x512xf32>
    %205 = arith.addf %203, %204 : vector<8x512xf32>
    %206 = arith.addf %205, %14 : vector<8x512xf32>
    %207 = vector.extract_strided_slice %206 {offsets = [0, 0], sizes = [8, 128], strides = [1, 1]} : vector<8x512xf32> to vector<8x128xf32>
    %208 = arith.negf %207 : vector<8x128xf32>
    %209 = math.exp %208 : vector<8x128xf32>
    %cst_39 = arith.constant 1.000000e+00 : f32
    %210 = vector.broadcast %cst_39 : f32 to vector<8x128xf32>
    %211 = arith.addf %210, %209 : vector<8x128xf32>
    %212 = arith.divf %210, %211 : vector<8x128xf32>
    %213 = vector.extract_strided_slice %206 {offsets = [0, 128], sizes = [8, 128], strides = [1, 1]} : vector<8x512xf32> to vector<8x128xf32>
    %214 = arith.negf %213 : vector<8x128xf32>
    %215 = math.exp %214 : vector<8x128xf32>
    %cst_40 = arith.constant 1.000000e+00 : f32
    %216 = vector.broadcast %cst_40 : f32 to vector<8x128xf32>
    %217 = arith.addf %216, %215 : vector<8x128xf32>
    %218 = arith.divf %216, %217 : vector<8x128xf32>
    %219 = vector.extract_strided_slice %206 {offsets = [0, 256], sizes = [8, 128], strides = [1, 1]} : vector<8x512xf32> to vector<8x128xf32>
    %220 = math.tanh %219 : vector<8x128xf32>
    %221 = vector.extract_strided_slice %206 {offsets = [0, 384], sizes = [8, 128], strides = [1, 1]} : vector<8x512xf32> to vector<8x128xf32>
    %222 = arith.negf %221 : vector<8x128xf32>
    %223 = math.exp %222 : vector<8x128xf32>
    %cst_41 = arith.constant 1.000000e+00 : f32
    %224 = vector.broadcast %cst_41 : f32 to vector<8x128xf32>
    %225 = arith.addf %224, %223 : vector<8x128xf32>
    %226 = arith.divf %224, %225 : vector<8x128xf32>
    %227 = arith.mulf %218, %198 : vector<8x128xf32>
    %228 = arith.mulf %212, %220 : vector<8x128xf32>
    %229 = arith.addf %227, %228 : vector<8x128xf32>
    %230 = math.tanh %229 : vector<8x128xf32>
    %231 = arith.mulf %226, %230 : vector<8x128xf32>
    %232 = vector.extract_strided_slice %0 {offsets = [0, 7], sizes = [8, 1], strides = [1, 1]} : vector<8x8xf32> to vector<8x1xf32>
    %233 = vector.broadcast %232 : vector<8x1xf32> to vector<8x512xf32>
    %234 = arith.mulf %233, %11 : vector<8x512xf32>
    %cst_42 = arith.constant dense<0.000000e+00> : vector<8x512xf32>
    %235 = tpu.matmul %231, %8, %cst_42 {dimension_numbers = #tpu.dot_dimension_numbers<[1], [0], [0], [1], [0, 0, 1, 1], [], []>} : vector<8x128xf32>, vector<128x512xf32>, vector<8x512xf32> -> vector<8x512xf32>
    %236 = arith.addf %234, %235 : vector<8x512xf32>
    %237 = arith.addf %236, %14 : vector<8x512xf32>
    %238 = vector.extract_strided_slice %237 {offsets = [0, 0], sizes = [8, 128], strides = [1, 1]} : vector<8x512xf32> to vector<8x128xf32>
    %239 = arith.negf %238 : vector<8x128xf32>
    %240 = math.exp %239 : vector<8x128xf32>
    %cst_43 = arith.constant 1.000000e+00 : f32
    %241 = vector.broadcast %cst_43 : f32 to vector<8x128xf32>
    %242 = arith.addf %241, %240 : vector<8x128xf32>
    %243 = arith.divf %241, %242 : vector<8x128xf32>
    %244 = vector.extract_strided_slice %237 {offsets = [0, 128], sizes = [8, 128], strides = [1, 1]} : vector<8x512xf32> to vector<8x128xf32>
    %245 = arith.negf %244 : vector<8x128xf32>
    %246 = math.exp %245 : vector<8x128xf32>
    %cst_44 = arith.constant 1.000000e+00 : f32
    %247 = vector.broadcast %cst_44 : f32 to vector<8x128xf32>
    %248 = arith.addf %247, %246 : vector<8x128xf32>
    %249 = arith.divf %247, %248 : vector<8x128xf32>
    %250 = vector.extract_strided_slice %237 {offsets = [0, 256], sizes = [8, 128], strides = [1, 1]} : vector<8x512xf32> to vector<8x128xf32>
    %251 = math.tanh %250 : vector<8x128xf32>
    %252 = vector.extract_strided_slice %237 {offsets = [0, 384], sizes = [8, 128], strides = [1, 1]} : vector<8x512xf32> to vector<8x128xf32>
    %253 = arith.negf %252 : vector<8x128xf32>
    %254 = math.exp %253 : vector<8x128xf32>
    %cst_45 = arith.constant 1.000000e+00 : f32
    %255 = vector.broadcast %cst_45 : f32 to vector<8x128xf32>
    %256 = arith.addf %255, %254 : vector<8x128xf32>
    %257 = arith.divf %255, %256 : vector<8x128xf32>
    %258 = arith.mulf %249, %229 : vector<8x128xf32>
    %259 = arith.mulf %243, %251 : vector<8x128xf32>
    %260 = arith.addf %258, %259 : vector<8x128xf32>
    %261 = math.tanh %260 : vector<8x128xf32>
    %262 = arith.mulf %257, %261 : vector<8x128xf32>
    %c0_46 = arith.constant 0 : index
    %c0_47 = arith.constant 0 : index
    %263 = vector.load %arg8[%c0_46, %c0_47] : memref<128x128xf32, #tpu.memory_space<vmem>>, vector<128x128xf32>
    %cst_48 = arith.constant dense<0.000000e+00> : vector<8x128xf32>
    %264 = tpu.matmul %262, %263, %cst_48 {dimension_numbers = #tpu.dot_dimension_numbers<[1], [0], [0], [1], [0, 0, 1, 1], [], []>} : vector<8x128xf32>, vector<128x128xf32>, vector<8x128xf32> -> vector<8x128xf32>
    %c0_49 = arith.constant 0 : index
    %c0_50 = arith.constant 0 : index
    %265 = vector.load %arg9[%c0_49, %c0_50] : memref<1x128xf32, #tpu.memory_space<vmem>>, vector<1x128xf32>
    %266 = vector.broadcast %265 : vector<1x128xf32> to vector<8x128xf32>
    %267 = arith.addf %264, %266 : vector<8x128xf32>
    %c0_51 = arith.constant 0 : index
    %c0_52 = arith.constant 0 : index
    %268 = vector.load %arg10[%c0_51, %c0_52] : memref<8x128xf32, #tpu.memory_space<vmem>>, vector<8x128xf32>
    tpu.vector_store %arg10[%c0_51, %c0_52], %267 {strides = array<i32>} : memref<8x128xf32, #tpu.memory_space<vmem>>, vector<8x128xf32>,
    return
  }
  func.func @transform_0(%arg0: i32) -> (i32, i32) {
    %c0_i32 = arith.constant 0 : i32
    %c0_i32_0 = arith.constant 0 : i32
    return %arg0, %c0_i32 : i32, i32
  }
  func.func @transform_1(%arg0: i32) -> (i32, i32) {
    %c0_i32 = arith.constant 0 : i32
    %c0_i32_0 = arith.constant 0 : i32
    return %arg0, %c0_i32 : i32, i32
  }
  func.func @transform_2(%arg0: i32) -> (i32, i32) {
    %c0_i32 = arith.constant 0 : i32
    %c0_i32_0 = arith.constant 0 : i32
    %c0_i32_1 = arith.constant 0 : i32
    return %c0_i32, %c0_i32_0 : i32, i32
  }
  func.func @transform_3(%arg0: i32) -> (i32, i32) {
    %c0_i32 = arith.constant 0 : i32
    %c0_i32_0 = arith.constant 0 : i32
    %c0_i32_1 = arith.constant 0 : i32
    return %c0_i32, %c0_i32_0 : i32, i32
  }
  func.func @transform_4(%arg0: i32) -> (i32, i32) {
    %c0_i32 = arith.constant 0 : i32
    %c0_i32_0 = arith.constant 0 : i32
    %c0_i32_1 = arith.constant 0 : i32
    return %c0_i32, %c0_i32_0 : i32, i32
  }
  func.func @transform_5(%arg0: i32) -> (i32, i32) {
    %c0_i32 = arith.constant 0 : i32
    %c0_i32_0 = arith.constant 0 : i32
    %c0_i32_1 = arith.constant 0 : i32
    return %c0_i32, %c0_i32_0 : i32, i32
  }
  func.func @transform_6(%arg0: i32) -> (i32, i32) {
    %c0_i32 = arith.constant 0 : i32
    %c0_i32_0 = arith.constant 0 : i32
    %c0_i32_1 = arith.constant 0 : i32
    return %c0_i32, %c0_i32_0 : i32, i32
  }
  func.func @transform_7(%arg0: i32) -> (i32, i32) {
    %c0_i32 = arith.constant 0 : i32
    %c0_i32_0 = arith.constant 0 : i32
    %c0_i32_1 = arith.constant 0 : i32
    return %c0_i32, %c0_i32_0 : i32, i32
  }
  func.func @transform_8(%arg0: i32) -> (i32, i32) {
    %c0_i32 = arith.constant 0 : i32
    %c0_i32_0 = arith.constant 0 : i32
    %c0_i32_1 = arith.constant 0 : i32
    return %c0_i32, %c0_i32_0 : i32, i32
  }
  func.func @transform_9(%arg0: i32) -> (i32, i32) {
    %c0_i32 = arith.constant 0 : i32
    %c0_i32_0 = arith.constant 0 : i32
    return %arg0, %c0_i32 : i32, i32
  }
}

</mosaic_0001>

<bundles_post_ra>
// kernel: conditional_lstm_forward.1
= control target key start
LH: loop header
LB: loop body
LE: loop exit
PB: predicated region body
PF: predicated region fallthrough
CT: control target
= control target key end

     0   :  { %14 = vsyncpa [#allocation3], 0  ;;  %s3353_s0 = inlined_call_operand.vmem [shape: f32[8,8], index: 0, kind: input, shape index: {}]   ;;  %s3354_s1 = inlined_call_operand.vmem [shape: f32[8,31], index: 1, kind: input, shape index: {}]   ;;  %s3355_s2 = inlined_call_operand.vmem [shape: f32[31,128], index: 2, kind: input, shape index: {}]   ;;  %s3356_s3 = inlined_call_operand.hbm [shape: f32[1,128], index: 3, kind: input, shape index: {}]   ;;  %s3357_s4 = inlined_call_operand.vmem [shape: f32[1,512], index: 4, kind: input, shape index: {}]   ;;  %s3358_s5 = inlined_call_operand.hbm [shape: f32[128,512], index: 5, kind: input, shape index: {}]   ;;  %s3359_s6 = inlined_call_operand.vmem [shape: f32[1,512], index: 6, kind: input, shape index: {}]   ;;  %s3360_s7 = inlined_call_operand.hbm [shape: f32[128,128], index: 7, kind: input, shape index: {}]   ;;  %s3361_s8 = inlined_call_operand.hbm [shape: f32[1,128], index: 8, kind: input, shape index: {}]   ;;  %s3362_s9 = inlined_call_operand.vmem [shape: f32[8,128], index: 9, kind: output, shape index: {}]  }
   0x1   :  { %15 = vsyncpa [#allocation5], 0 }
   0x2   :  { %16 = vsyncpa [#allocation8], 0  ;;  %s2731_s30 = smov [#allocation4]   ;;  %s2637_s13 = scalar_lea.hbm %s3358_s5, 8192 }
   0x3   :  { %s40_s10 = sshll.u32 %s2731_s30, 4  ;;  %p2638_p0 = scmp.ne.s32.totalorder %s3358_s5, %s2637_s13  ;;  %s41_s10 = int_to_ptr.vmem [resolvable:$true] %s40_s10 }
   0x4   :  { %p2641_p1 = scmp.lt.u32.totalorder %s2637_s13, %s3358_s5 }
   0x6   :  { %p2643_p2 = pnand %p2641_p1, %p2638_p0 }
   0x8   :  { %2646 = shalt.err (!%p2643_p2)
}
   0x9   :  { %s2647_s18 = scalar_lea.vmem %s41_s10, 8192  ;;  %p2652_p4 = scmp.lt.s32.totalorder %s41_s10, %s41_s10 }
   0xa   :  { %p2648_p3 = scmp.ne.s32.totalorder %s41_s10, %s2647_s18  ;;  %p2653_p5 = scmp.lt.s32.totalorder %s2647_s18, %s2647_s18 }
   0xc   :  { %p2654_p6 = por %p2653_p5, %p2652_p4 }
   0xe   :  { %p2655_p7 = pnand %p2654_p6, %p2648_p3 }
  0x10   :  { %2658 = shalt.err (!%p2655_p7)
}
  0x11   :  { %s2732_s19 = smov 512   ;;  %s2733_s20 = smov 32  }
  0x12   :  { %46 = dma.hbm_to_vmem [thread:$0]  %s3358_s5, 8192, %s41_s10, [#allocation5], %s2732_s19, %s2732_s19, %s2733_s20  }
  0x13   :  { %s2734_s23 = smov [#allocation2]   ;;  %s2735_s25 = smov [#allocation6]  }
  0x14   :  { %s29_s24 = sshll.u32 %s2734_s23, 4  ;;  %s54_s26 = sshll.u32 %s2735_s25, 4  ;;  %s30_s24 = int_to_ptr.vmem [resolvable:$true] %s29_s24  ;;  %s55_s26 = int_to_ptr.vmem [resolvable:$true] %s54_s26 }
  0x15   :  { %s2659_s29 = scalar_lea.hbm %s3356_s3, 16 }
  0x16   :  { %p2660_p8 = scmp.ne.s32.totalorder %s3356_s3, %s2659_s29  ;;  %p2663_p9 = scmp.lt.u32.totalorder %s2659_s29, %s3356_s3 }
  0x18   :  { %p2665_p10 = pnand %p2663_p9, %p2660_p8 }
  0x1a   :  { %2668 = shalt.err (!%p2665_p10)
}
  0x1b   :  { %s2669_s5 = scalar_lea.vmem %s30_s24, 16  ;;  %s2673_s10 = scalar_lea.vmem %s30_s24, 32 }
  0x1c   :  { %p2670_p11 = scmp.ne.s32.totalorder %s30_s24, %s2669_s5  ;;  %p2674_p12 = scmp.lt.s32.totalorder %s30_s24, %s30_s24 }
  0x1d   :  { %p2675_p13 = scmp.lt.s32.totalorder %s2673_s10, %s2669_s5 }
  0x1f   :  { %p2676_p0 = por %p2675_p13, %p2674_p12 }
  0x21   :  { %p2677_p1 = pnand %p2676_p0, %p2670_p11 }
  0x23   :  { %2680 = shalt.err (!%p2677_p1)
}
  0x24   :  { %32 = dma.hbm_to_vmem [thread:$0]  %s3356_s3, 16, %s30_s24, [#allocation3]  }
  0x25   :  { %s2681_s18 = scalar_lea.hbm %s3360_s7, 2048 }
  0x26   :  { %p2682_p2 = scmp.ne.s32.totalorder %s3360_s7, %s2681_s18  ;;  %p2685_p3 = scmp.lt.u32.totalorder %s2681_s18, %s3360_s7 }
  0x28   :  { %p2687_p4 = pnand %p2685_p3, %p2682_p2 }
  0x2a   :  { %2690 = shalt.err (!%p2687_p4)
}
  0x2b   :  { %s2691_s23 = scalar_lea.vmem %s55_s26, 2048  ;;  %p2696_p6 = scmp.lt.s32.totalorder %s55_s26, %s55_s26 }
  0x2c   :  { %p2692_p5 = scmp.ne.s32.totalorder %s55_s26, %s2691_s23  ;;  %p2697_p7 = scmp.lt.s32.totalorder %s2691_s23, %s2691_s23 }
  0x2e   :  { %p2698_p8 = por %p2697_p7, %p2696_p6 }
  0x30   :  { %p2699_p9 = pnand %p2698_p8, %p2692_p5 }
  0x32   :  { %2702 = shalt.err (!%p2699_p9)
}
  0x33   :  { %s2736_s3 = smov 128   ;;  %s2737_s24 = smov 8  }
  0x34   :  { %60 = dma.hbm_to_vmem [thread:$0]  %s3360_s7, 2048, %s55_s26, [#allocation5], %s2736_s3, %s2736_s3, %s2737_s24  }
  0x35   :  { %s2738_s28 = smov [#allocation7]   ;;  %s2703_s12 = scalar_lea.hbm %s3361_s8, 16 }
  0x36   :  { %s67_s29 = sshll.u32 %s2738_s28, 4  ;;  %p2704_p10 = scmp.ne.s32.totalorder %s3361_s8, %s2703_s12  ;;  %s68_s29 = int_to_ptr.vmem [resolvable:$true] %s67_s29 }
  0x37   :  { %p2707_p11 = scmp.lt.u32.totalorder %s2703_s12, %s3361_s8 }
  0x39   :  { %p2709_p12 = pnand %p2707_p11, %p2704_p10 }
  0x3b   :  { %2712 = shalt.err (!%p2709_p12)
}
  0x3c   :  { %s2713_s15 = scalar_lea.vmem %s68_s29, 16  ;;  %s2717_s7 = scalar_lea.vmem %s68_s29, 32 }
  0x3d   :  { %p2714_p13 = scmp.ne.s32.totalorder %s68_s29, %s2713_s15  ;;  %p2718_p0 = scmp.lt.s32.totalorder %s68_s29, %s68_s29 }
  0x3e   :  { %p2719_p1 = scmp.lt.s32.totalorder %s2717_s7, %s2713_s15 }
  0x40   :  { %p2720_p2 = por %p2719_p1, %p2718_p0 }
  0x42   :  { %p2721_p3 = pnand %p2720_p2, %p2714_p13 }
  0x44   :  { %2724 = shalt.err (!%p2721_p3)
}
  0x45   :  { %70 = dma.hbm_to_vmem [thread:$0]  %s3361_s8, 16, %s68_s29, [#allocation8]  }
  0x46   :  { %2725 = dma.done.wait [#allocation3], 16  }
  0x47   :  { %2726 = vsyncadd [#allocation3], 4294967280 }
  0x48   :  { %2727 = dma.done.wait [#allocation5], 10240  }
  0x49   :  { %2728 = vsyncadd [#allocation5], 4294957056 }
  0x4a   :  { %2729 = dma.done.wait [#allocation8], 16  }
  0x4b   :  { %2730 = vsyncadd [#allocation8], 4294967280  ;;  %v2739_v0 = vmov 0.0|0.0   ;;  %vm2740_vm0 = vmmov 0   ;;  %v2741_v1 = vmov 0.0   ;;  %vm100_vm1 = vcmask 1046528  }
  0x4c   :  { %1936 = vmatprep.subr.bf16.mxu0 %v2739_v0  ;;  %1898 = vmatprep.mubr.msk.f32.mxu0 %vm2740_vm0, %v2741_v1  ;;  %v85_v2 = vld [vmem:[%s3355_s2] sm:$0xff]  ;;  %v86_v3 = vld [vmem:[%s3355_s2 + $0x8] sm:$0xff]  ;;  %v87_v4 = vld [vmem:[%s3355_s2 + $0x10] sm:$0xff]  ;;  %vm2742_vm2 = vmmov 1   ;;  %vm96_vm4 = vcmask 252928  }
  0x4d   :  { %355 = vmatprep.mubr.f32.mxu1 %v2741_v1  ;;  %v1937_v5 = vpack.c.bf16 %v86_v3, %v85_v2  ;;  %v88_v6 = vld [vmem:[%s3355_s2 + $0x18] sm:$0x7f]  ;;  %vm2865_vm3 = vmpackc.low %vm100_vm1, %vm2742_vm2  ;;  %v175_v8 = vld [vmem:[#allocation4 + $0x8] sm:$0xff] }
  0x4e   :  { %v179_v9 = vld [vmem:[#allocation4 + $0x28] sm:$0xff]  ;;  %v177_v10 = vld [vmem:[#allocation4 + $0x18] sm:$0xff]  ;;  %v1940_v12 = vpack.c.bf16 %v88_v6, %v87_v4  ;;  %v174_v14 = vld [vmem:[#allocation4] sm:$0xff] }
  0x4f   :  { %v181_v11 = vld [vmem:[#allocation4 + $0x38] sm:$0xff]  ;;  %1938 = vmatpush3.bf16.msra.mxu0 %v1937_v5  ;;  %v2869_v13 = vpack.c.bf16 %v179_v9, %v175_v8  ;;  %v178_v15 = vld [vmem:[#allocation4 + $0x20] sm:$0xff]  ;;  %v176_v16 = vld [vmem:[#allocation4 + $0x10] sm:$0xff] }
  0x50   :  { %1939 = vmatprep.subr.bf16.mxu0 %v2739_v0  ;;  %v2872_v17 = vpack.c.bf16 %v181_v11, %v177_v10  ;;  %v2874_v18 = vpack.c.bf16 %v178_v15, %v174_v14  ;;  %v180_v19 = vld [vmem:[#allocation4 + $0x30] sm:$0xff]  ;;  %v183_v20 = vld [vmem:[#allocation4 + $0x48] sm:$0xff]  ;;  %v185_v23 = vld [vmem:[#allocation4 + $0x58] sm:$0xff] }
  0x51   :  { %v187_v21 = vld [vmem:[#allocation4 + $0x68] sm:$0xff]  ;;  %1944 = vmatprep.subr.bf16.mxu1 %v2869_v13  ;;  %v189_v24 = vld [vmem:[#allocation4 + $0x78] sm:$0xff]  ;;  %v182_v25 = vld [vmem:[#allocation4 + $0x40] sm:$0xff]  ;;  %v2885_v28 = vpack.c.bf16 %v180_v19, %v176_v16 }
  0x52   :  { %v2877_v22 = vpack.c.bf16 %v187_v21, %v183_v20  ;;  %v84_v26 = vld [vmem:[%s3354_s1] sm:$0xff]  ;;  %1946 = vmatpush1.bf16.msra.mxu1 %v2874_v18  ;;  %v184_v30 = vld [vmem:[#allocation4 + $0x50] sm:$0xff]  ;;  %v191_v31 = vld [vmem:[#allocation4 + $0x88] sm:$0xff]  ;;  %v2891_v33 = vpack.c.bf16 %v189_v24, %v185_v23 }
  0x53   :  { %v186_v27 = vld [vmem:[#allocation4 + $0x60] sm:$0xff]  ;;  %1942 = vmatpush3.bf16.msk.msra.mxu0 %vm2865_vm3, %v1940_v12  ;;  %v195_v32 = vld [vmem:[#allocation4 + $0xa8] sm:$0xff]  ;;  %v188_v34 = vld [vmem:[#allocation4 + $0x70] sm:$0xff] }
  0x54   :  { %1948 = vmatprep.subr.bf16.mxu1 %v2877_v22  ;;  %v2888_v29 = vpack.c.bf16 %v186_v27, %v182_v25  ;;  %1976 = vmatprep.subr.bf16.mxu0 %v2872_v17  ;;  %v2893_v35 = vpack.c.bf16 %v195_v32, %v191_v31  ;;  %v190_v36 = vld [vmem:[#allocation4 + $0x80] sm:$0xff]  ;;  %v193_v38 = vld [vmem:[#allocation4 + $0x98] sm:$0xff]  ;;  %v199_v40 = vld [vmem:[#allocation4 + $0xc8] sm:$0xff]  ;;  %v2900_v43 = vpack.c.bf16 %v188_v34, %v184_v30 }
  0x55   :  { %v194_v37 = vld [vmem:[#allocation4 + $0xa0] sm:$0xff]  ;;  %v197_v39 = vld [vmem:[#allocation4 + $0xb8] sm:$0xff]  ;;  %v203_v42 = vld [vmem:[#allocation4 + $0xe8] sm:$0xff] }
  0x56   :  { %1899 = vmatmul.mubr.msk.f32.vlgmr.msra.gmra.mrb[0].mxu0 %vm96_vm4, %v84_v26  ;;  %1950 = vmatpush1.bf16.msra.mxu1 %v2888_v29  ;;  %v2897_v41 = vpack.c.bf16 %v194_v37, %v190_v36  ;;  %v192_v44 = vld [vmem:[#allocation4 + $0x90] sm:$0xff]  ;;  %v2903_v45 = vpack.c.bf16 %v203_v42, %v199_v40  ;;  %v198_v46 = vld [vmem:[#allocation4 + $0xc0] sm:$0xff]  ;;  %v2906_v48 = vpack.c.bf16 %v197_v39, %v193_v38  ;;  %v207_v50 = vld [vmem:[#allocation4 + $0x108] sm:$0xff] }
  0x57   :  { %1978 = vmatpush1.bf16.msra.mxu0 %v2885_v28  ;;  %1952 = vmatprep.subr.bf16.mxu1 %v2893_v35  ;;  %v202_v47 = vld [vmem:[#allocation4 + $0xe0] sm:$0xff]  ;;  %v196_v49 = vld [vmem:[#allocation4 + $0xb0] sm:$0xff]  ;;  %v211_v51 = vld [vmem:[#allocation4 + $0x128] sm:$0xff] }
  0x58   :  { %1980 = vmatprep.subr.bf16.mxu0 %v2891_v33  ;;  %426 = vmatprep.mubr.f32.mxu0 %v2741_v1  ;;  %v201_v52 = vld [vmem:[#allocation4 + $0xd8] sm:$0xff]  ;;  %v2910_v54 = vpack.c.bf16 %v202_v47, %v198_v46  ;;  %v2913_v55 = vpack.c.bf16 %v196_v49, %v192_v44  ;;  %v200_v56 = vld [vmem:[#allocation4 + $0xd0] sm:$0xff]  ;;  %v2916_v57 = vpack.c.bf16 %v211_v51, %v207_v50  ;;  %v206_v58 = vld [vmem:[#allocation4 + $0x100] sm:$0xff] }
  0x59   :  { %v205_v53 = vld [vmem:[#allocation4 + $0xf8] sm:$0xff]  ;;  %v210_v59 = vld [vmem:[#allocation4 + $0x120] sm:$0xff]  ;;  %v204_v61 = vld [vmem:[#allocation4 + $0xf0] sm:$0xff] }
  0x5a   :  { %1954 = vmatpush1.bf16.msra.mxu1 %v2897_v41  ;;  %v2919_v60 = vpack.c.bf16 %v205_v53, %v201_v52  ;;  %v215_v62 = vld [vmem:[#allocation4 + $0x148] sm:$0xff]  ;;  %v209_v2 = vld [vmem:[#allocation4 + $0x118] sm:$0xff]  ;;  %v2922_v4 = vpack.c.bf16 %v210_v59, %v206_v58  ;;  %v2925_v5 = vpack.c.bf16 %v204_v61, %v200_v56  ;;  %v208_v6 = vld [vmem:[#allocation4 + $0x110] sm:$0xff]  ;;  %v2743_v61 = vmov 0  }
  0x5b   :  { %1982 = vmatpush1.bf16.msra.mxu0 %v2900_v43  ;;  %1956 = vmatprep.subr.bf16.mxu1 %v2903_v45  ;;  %v219_v63 = vld [vmem:[#allocation4 + $0x168] sm:$0xff]  ;;  %v213_v3 = vld [vmem:[#allocation4 + $0x138] sm:$0xff]  ;;  %v214_v8 = vld [vmem:[#allocation4 + $0x140] sm:$0xff] }
  0x5c   :  { %1984 = vmatprep.subr.bf16.mxu0 %v2906_v48  ;;  %v2928_v7 = vpack.c.bf16 %v219_v63, %v215_v62  ;;  %v218_v9 = vld [vmem:[#allocation4 + $0x160] sm:$0xff]  ;;  %v2931_v10 = vpack.c.bf16 %v213_v3, %v209_v2  ;;  %v212_v11 = vld [vmem:[#allocation4 + $0x130] sm:$0xff]  ;;  %v223_v12 = vld [vmem:[#allocation4 + $0x188] sm:$0xff]  ;;  %2499 = vset.pattern.permute.xlu0 %v2743_v61 }
  0x5d   :  { %v227_v14 = vld [vmem:[#allocation4 + $0x1a8] sm:$0xff]  ;;  %v217_v15 = vld [vmem:[#allocation4 + $0x158] sm:$0xff]  ;;  %v2934_v19 = vpack.c.bf16 %v218_v9, %v214_v8  ;;  %v2937_v20 = vpack.c.bf16 %v212_v11, %v208_v6  ;;  %v216_v21 = vld [vmem:[#allocation4 + $0x150] sm:$0xff]  ;;  %v2744_v6 = vmov 1   ;;  %v240_v8 = vlaneseq }
  0x5e   :  { %1958 = vmatpush1.bf16.msra.mxu1 %v2910_v54  ;;  %v221_v16 = vld [vmem:[#allocation4 + $0x178] sm:$0xff]  ;;  %v2940_v23 = vpack.c.bf16 %v227_v14, %v223_v12  ;;  %v222_v24 = vld [vmem:[#allocation4 + $0x180] sm:$0xff]  ;;  %v220_v27 = vld [vmem:[#allocation4 + $0x170] sm:$0xff] }
  0x5f   :  { %1986 = vmatpush1.bf16.msra.mxu0 %v2913_v55  ;;  %1960 = vmatprep.subr.bf16.mxu1 %v2916_v57  ;;  %v226_v25 = vld [vmem:[#allocation4 + $0x1a0] sm:$0xff]  ;;  %v2943_v26 = vpack.c.bf16 %v221_v16, %v217_v15  ;;  %v231_v30 = vld [vmem:[#allocation4 + $0x1c8] sm:$0xff]  ;;  %v225_v32 = vld [vmem:[#allocation4 + $0x198] sm:$0xff]  ;;  %v2949_v37 = vpack.c.bf16 %v220_v27, %v216_v21  ;;  %v241_v9 = vshrl.u32 %v240_v8, 7 }
  0x60   :  { %1988 = vmatprep.subr.bf16.mxu0 %v2919_v60  ;;  %v235_v31 = vld [vmem:[#allocation4 + $0x1e8] sm:$0xff]  ;;  %v229_v34 = vld [vmem:[#allocation4 + $0x1b8] sm:$0xff]  ;;  %v2946_v36 = vpack.c.bf16 %v226_v25, %v222_v24  ;;  %v224_v40 = vld [vmem:[#allocation4 + $0x190] sm:$0xff] }
  0x61   :  { %v2952_v38 = vpack.c.bf16 %v235_v31, %v231_v30  ;;  %v2955_v39 = vpack.c.bf16 %v229_v34, %v225_v32  ;;  %v228_v42 = vld [vmem:[#allocation4 + $0x1b0] sm:$0xff]  ;;  %v233_v44 = vld [vmem:[#allocation4 + $0x1d8] sm:$0xff]  ;;  %v230_v50 = vld [vmem:[#allocation4 + $0x1c0] sm:$0xff]  ;;  %v242_v11 = vsub.s32 0, %v241_v9  ;;  %v246_v14 = vsub.s32 1, %v241_v9 }
  0x62   :  { %1962 = vmatpush1.bf16.msra.mxu1 %v2922_v4  ;;  %v237_v46 = vld [vmem:[#allocation4 + $0x1f8] sm:$0xff]  ;;  %v2959_v47 = vpack.c.bf16 %v228_v42, %v224_v40  ;;  %v234_v51 = vld [vmem:[#allocation4 + $0x1e0] sm:$0xff]  ;;  %v232_v52 = vld [vmem:[#allocation4 + $0x1d0] sm:$0xff]  ;;  %v254_v24 = vsub.s32 3, %v241_v9  ;;  %v250_v34 = vsub.s32 2, %v241_v9 }
  0x63   :  { %1990 = vmatpush1.bf16.msra.mxu0 %v2925_v5  ;;  %1964 = vmatprep.subr.bf16.mxu1 %v2928_v7  ;;  %v2963_v49 = vpack.c.bf16 %v237_v46, %v233_v44  ;;  %v2967_v53 = vpack.c.bf16 %v234_v51, %v230_v50  ;;  %v236_v56 = vld [vmem:[#allocation4 + $0x1f0] sm:$0xff]  ;;  %v2978_v59 = vld [vmem:[%s3353_s0] sm:$0xff] }
  0x64   :  { %1992 = vmatprep.subr.bf16.mxu0 %v2931_v10  ;;  %v2969_v58 = vpack.c.bf16 %v236_v56, %v232_v52  ;;  %284 = vperm.xlu0 %2499, %v2978_v59   ;;  %v1840_v62 = vld [vmem:[#allocation2] ss:$0 sm:$0xff] }
  0x65   :  { %v238_v12 = vld [vmem:[%s3357_s4] sm:$0xf] }
  0x66   :  { %1966 = vmatpush1.bf16.msra.mxu1 %v2934_v19  ;;  %v3019_v15 = vrot.slane %v238_v12, %v242_v11  ;;  %v3021_v21 = vrot.slane %v238_v12, %v246_v14  ;;  %v260_v25 = vld [vmem:[%s3359_s6] sm:$0xf]  ;;  %v3028_v31 = vrot.slane %v238_v12, %v254_v24 }
  0x67   :  { %1994 = vmatpush1.bf16.msra.mxu0 %v2937_v20  ;;  %1968 = vmatprep.subr.bf16.mxu1 %v2940_v23  ;;  %v3030_v32 = vrot.slane %v260_v25, %v242_v11  ;;  %v3032_v44 = vrot.slane %v260_v25, %v246_v14  ;;  %v3043_v14 = vrot.slane %v260_v25, %v250_v34 }
  0x68   :  { %1996 = vmatprep.subr.bf16.mxu0 %v2943_v26  ;;  %2500 = vset.pattern.permute.xlu0 %v2744_v6  ;;  %v3039_v6 = vrot.slane %v260_v25, %v254_v24 }
  0x69   :  { %466 = vperm.xlu0 %2500, %v2978_v59  }
  0x6a   :  { %1970 = vmatpush1.bf16.msra.mxu1 %v2946_v36 }
  0x6b   :  { %1998 = vmatpush1.bf16.msra.mxu0 %v2949_v37  ;;  %1972 = vmatprep.subr.bf16.mxu1 %v2952_v38 }
  0x6c   :  { %2000 = vmatprep.subr.bf16.mxu0 %v2955_v39 }
  0x6e   :  { %1974 = vmatpush1.bf16.msra.mxu1 %v2967_v53 }
  0x6f   :  { %2002 = vmatpush1.bf16.msra.mxu0 %v2959_v47  ;;  %2008 = vmatprep.subr.bf16.mxu1 %v2869_v13 }
  0x70   :  { %2004 = vmatprep.subr.bf16.mxu0 %v2963_v49 }
  0x73   :  { %2006 = vmatpush1.bf16.msra.mxu0 %v2969_v58 }
  0x74   :  { %2040 = vmatprep.subr.bf16.mxu0 %v2872_v17 }
  0xe3   :  { %v285_v16 = vpop.permute.xlu0 %284 }
  0xe4   :  { %v287_v27 = vmul.f32 %v285_v16, %v3019_v15  ;;  %v288_v30 = vmul.f32 %v285_v16, %v3021_v21  ;;  %v290_v56 = vmul.f32 %v285_v16, %v3028_v31 }
 0x129   :  { %v170_v63 = vpop.f32.mrb[0].mxu0 }
 0x12a   :  { %v171_v2 = vadd.f32 %v1840_v62, %v170_v63  ;;  %v1900_v3 = vpop.f32.mrb[1].mxu0  ;;  %v3036_v62 = vrot.slane %v238_v12, %v250_v34 }
 0x12c   :  { %356 = vmatmul.mubr.f32.vlgmr.msra.gmra.mrb[0].mxu1 %v171_v2  ;;  %427 = vmatmul.mubr.f32.vlgmr.msra.gmra.mrb[2].mxu0 %v171_v2  ;;  %v289_v9 = vmul.f32 %v285_v16, %v3036_v62 }
 0x12d   :  { %2010 = vmatpush1.bf16.msra.mxu1 %v2874_v18  ;;  %2042 = vmatpush1.bf16.msra.mxu0 %v2885_v28 }
 0x12e   :  { %2012 = vmatprep.subr.bf16.mxu1 %v2877_v22  ;;  %2044 = vmatprep.subr.bf16.mxu0 %v2891_v33 }
 0x12f   :  { %537 = vmatprep.mubr.f32.mxu1 %v2741_v1  ;;  %608 = vmatprep.mubr.f32.mxu0 %v2741_v1 }
 0x131   :  { %2014 = vmatpush1.bf16.msra.mxu1 %v2888_v29  ;;  %2046 = vmatpush1.bf16.msra.mxu0 %v2900_v43 }
 0x132   :  { %2016 = vmatprep.subr.bf16.mxu1 %v2893_v35  ;;  %2048 = vmatprep.subr.bf16.mxu0 %v2906_v48 }
 0x135   :  { %2018 = vmatpush1.bf16.msra.mxu1 %v2897_v41  ;;  %2050 = vmatpush1.bf16.msra.mxu0 %v2913_v55 }
 0x136   :  { %2020 = vmatprep.subr.bf16.mxu1 %v2903_v45  ;;  %2052 = vmatprep.subr.bf16.mxu0 %v2919_v60 }
 0x139   :  { %2022 = vmatpush1.bf16.msra.mxu1 %v2910_v54  ;;  %2054 = vmatpush1.bf16.msra.mxu0 %v2925_v5 }
 0x13a   :  { %2024 = vmatprep.subr.bf16.mxu1 %v2916_v57  ;;  %2056 = vmatprep.subr.bf16.mxu0 %v2931_v10 }
 0x13d   :  { %2026 = vmatpush1.bf16.msra.mxu1 %v2922_v4  ;;  %2058 = vmatpush1.bf16.msra.mxu0 %v2937_v20 }
 0x13e   :  { %2028 = vmatprep.subr.bf16.mxu1 %v2928_v7  ;;  %2060 = vmatprep.subr.bf16.mxu0 %v2943_v26 }
 0x141   :  { %2030 = vmatpush1.bf16.msra.mxu1 %v2934_v19  ;;  %2062 = vmatpush1.bf16.msra.mxu0 %v2949_v37 }
 0x142   :  { %2032 = vmatprep.subr.bf16.mxu1 %v2940_v23  ;;  %2064 = vmatprep.subr.bf16.mxu0 %v2955_v39 }
 0x145   :  { %2034 = vmatpush1.bf16.msra.mxu1 %v2946_v36  ;;  %2066 = vmatpush1.bf16.msra.mxu0 %v2959_v47 }
 0x146   :  { %2036 = vmatprep.subr.bf16.mxu1 %v2952_v38  ;;  %2068 = vmatprep.subr.bf16.mxu0 %v2963_v49 }
 0x149   :  { %2038 = vmatpush1.bf16.msra.mxu1 %v2967_v53  ;;  %2070 = vmatpush1.bf16.msra.mxu0 %v2969_v58 }
 0x14a   :  { %2072 = vmatprep.subr.bf16.mxu1 %v2869_v13  ;;  %2104 = vmatprep.subr.bf16.mxu0 %v2872_v17 }
 0x1ff   :  { %v357_v40 = vpop.f32.mrb[0].mxu1  ;;  %v428_v42 = vpop.f32.mrb[2].mxu0 }
 0x200   :  { %v433_v46 = vadd.f32 %v357_v40, %v287_v27  ;;  %v359_v50 = vpop.f32.mrb[1].mxu1  ;;  %v430_v51 = vpop.f32.mrb[3].mxu0  ;;  %v435_v27 = vadd.f32 %v428_v42, %v289_v9 }
 0x201   :  { %v434_v52 = vadd.f32 %v359_v50, %v288_v30  ;;  %v436_v8 = vadd.f32 %v430_v51, %v290_v56  ;;  %v467_v9 = vpop.permute.xlu0 %466 }
 0x202   :  { %v437_v61 = vadd.f32 %v433_v46, %v3030_v32  ;;  %v439_v12 = vadd.f32 %v435_v27, %v3043_v14  ;;  %v470_v27 = vmul.f32 %v467_v9, %v3021_v21 }
 0x203   :  { %v438_v63 = vadd.f32 %v434_v52, %v3032_v44  ;;  %v440_v11 = vadd.f32 %v436_v8, %v3039_v6  ;;  %v2745_v8 = vmov 2  }
 0x204   :  { %v1843_v2 = vmul.f32 -1.442695, %v437_v61  ;;  %2501 = vset.pattern.permute.xlu1 %v2745_v8 }
 0x205   :  { %v1844_v3 = vmul.f32 -1.442695, %v438_v63  ;;  %v1845_v30 = vmul.f32 -1.442695, %v440_v11  ;;  %648 = vperm.xlu1 %2501, %v2978_v59   ;;  %v469_v11 = vmul.f32 %v467_v9, %v3019_v15 }
 0x206   :  { %2508 = vpow2.f32 %v1843_v2 }
 0x207   :  { %2510 = vpow2.f32 %v1844_v3 }
 0x208   :  { %2512 = vpow2.f32 %v1845_v30 }
 0x209   :  { %2514 = vtanh.f32 %v439_v12 }
 0x210   :  { %v2509_v40 = vpop.eup %2508 }
 0x211   :  { %v2511_v46 = vpop.eup %2510  ;;  %v444_v50 = vadd.f32 1.0, %v2509_v40 }
 0x212   :  { %v450_v24 = vadd.f32 1.0, %v2511_v46  ;;  %v2513_v51 = vpop.eup %2512 }
 0x213   :  { %2516 = vrcp.f32 %v444_v50  ;;  %v2515_v52 = vpop.eup %2514  ;;  %v457_v63 = vadd.f32 1.0, %v2513_v51  ;;  %v472_v51 = vmul.f32 %v467_v9, %v3028_v31 }
 0x214   :  { %2518 = vrcp.f32 %v450_v24 }
 0x215   :  { %2520 = vrcp.f32 %v457_v63 }
 0x21d   :  { %v2517_v16 = vpop.eup %2516 }
 0x21e   :  { %v2519_v56 = vpop.eup %2518  ;;  %v461_v61 = vmul.f32 %v2517_v16, %v2515_v52 }
 0x21f   :  { %v460_v25 = vmul.f32 0.0, %v2519_v56  ;;  %v2521_v42 = vpop.eup %2520 }
 0x221   :  { %v3046_v34 = vadd.f32 %v461_v61, %v460_v25  ;;  %v471_v25 = vmul.f32 %v467_v9, %v3036_v62 }
 0x223   :  { %2522 = vtanh.f32 %v3046_v34 }
 0x22d   :  { %v2523_v2 = vpop.eup %2522 }
 0x22e   :  { %v464_v3 = vmul.f32 %v2523_v2, %v2521_v42 }
 0x230   :  { %538 = vmatmul.mubr.f32.vlgmr.msra.gmra.mrb[2].mxu1 %v464_v3  ;;  %609 = vmatmul.mubr.f32.vlgmr.msra.gmra.mrb[4].mxu0 %v464_v3 }
 0x231   :  { %2074 = vmatpush1.bf16.msra.mxu1 %v2874_v18  ;;  %2106 = vmatpush1.bf16.msra.mxu0 %v2885_v28 }
 0x232   :  { %2076 = vmatprep.subr.bf16.mxu1 %v2877_v22  ;;  %2108 = vmatprep.subr.bf16.mxu0 %v2891_v33 }
 0x233   :  { %719 = vmatprep.mubr.f32.mxu1 %v2741_v1  ;;  %790 = vmatprep.mubr.f32.mxu0 %v2741_v1 }
 0x235   :  { %2078 = vmatpush1.bf16.msra.mxu1 %v2888_v29  ;;  %2110 = vmatpush1.bf16.msra.mxu0 %v2900_v43 }
 0x236   :  { %2080 = vmatprep.subr.bf16.mxu1 %v2893_v35  ;;  %2112 = vmatprep.subr.bf16.mxu0 %v2906_v48 }
 0x239   :  { %2082 = vmatpush1.bf16.msra.mxu1 %v2897_v41  ;;  %2114 = vmatpush1.bf16.msra.mxu0 %v2913_v55 }
 0x23a   :  { %2084 = vmatprep.subr.bf16.mxu1 %v2903_v45  ;;  %2116 = vmatprep.subr.bf16.mxu0 %v2919_v60 }
 0x23d   :  { %2086 = vmatpush1.bf16.msra.mxu1 %v2910_v54  ;;  %2118 = vmatpush1.bf16.msra.mxu0 %v2925_v5 }
 0x23e   :  { %2088 = vmatprep.subr.bf16.mxu1 %v2916_v57  ;;  %2120 = vmatprep.subr.bf16.mxu0 %v2931_v10 }
 0x241   :  { %2090 = vmatpush1.bf16.msra.mxu1 %v2922_v4  ;;  %2122 = vmatpush1.bf16.msra.mxu0 %v2937_v20 }
 0x242   :  { %2092 = vmatprep.subr.bf16.mxu1 %v2928_v7  ;;  %2124 = vmatprep.subr.bf16.mxu0 %v2943_v26 }
 0x245   :  { %2094 = vmatpush1.bf16.msra.mxu1 %v2934_v19  ;;  %2126 = vmatpush1.bf16.msra.mxu0 %v2949_v37 }
 0x246   :  { %2096 = vmatprep.subr.bf16.mxu1 %v2940_v23  ;;  %2128 = vmatprep.subr.bf16.mxu0 %v2955_v39 }
 0x249   :  { %2098 = vmatpush1.bf16.msra.mxu1 %v2946_v36  ;;  %2130 = vmatpush1.bf16.msra.mxu0 %v2959_v47 }
 0x24a   :  { %2100 = vmatprep.subr.bf16.mxu1 %v2952_v38  ;;  %2132 = vmatprep.subr.bf16.mxu0 %v2963_v49 }
 0x24d   :  { %2102 = vmatpush1.bf16.msra.mxu1 %v2967_v53  ;;  %2134 = vmatpush1.bf16.msra.mxu0 %v2969_v58 }
 0x24e   :  { %2136 = vmatprep.subr.bf16.mxu1 %v2869_v13  ;;  %2168 = vmatprep.subr.bf16.mxu0 %v2872_v17 }
 0x303   :  { %v539_v30 = vpop.f32.mrb[2].mxu1  ;;  %v610_v12 = vpop.f32.mrb[4].mxu0 }
 0x304   :  { %v615_v40 = vadd.f32 %v539_v30, %v469_v11  ;;  %v541_v46 = vpop.f32.mrb[3].mxu1  ;;  %v612_v50 = vpop.f32.mrb[5].mxu0  ;;  %v617_v2 = vadd.f32 %v610_v12, %v471_v25 }
 0x305   :  { %v616_v24 = vadd.f32 %v541_v46, %v470_v27  ;;  %v618_v63 = vadd.f32 %v612_v50, %v472_v51  ;;  %v649_v25 = vpop.permute.xlu1 %648 }
 0x306   :  { %v619_v52 = vadd.f32 %v615_v40, %v3030_v32  ;;  %v621_v8 = vadd.f32 %v617_v2, %v3043_v14  ;;  %v652_v2 = vmul.f32 %v649_v25, %v3021_v21 }
 0x307   :  { %v620_v16 = vadd.f32 %v616_v24, %v3032_v44  ;;  %v622_v42 = vadd.f32 %v618_v63, %v3039_v6 }
 0x308   :  { %v1846_v56 = vmul.f32 -1.442695, %v619_v52 }
 0x309   :  { %v1847_v61 = vmul.f32 -1.442695, %v620_v16  ;;  %v1848_v3 = vmul.f32 -1.442695, %v622_v42  ;;  %v651_v42 = vmul.f32 %v649_v25, %v3019_v15 }
 0x30a   :  { %2524 = vpow2.f32 %v1846_v56 }
 0x30b   :  { %2526 = vpow2.f32 %v1847_v61 }
 0x30c   :  { %2528 = vpow2.f32 %v1848_v3 }
 0x30d   :  { %2530 = vtanh.f32 %v621_v8 }
 0x314   :  { %v2525_v11 = vpop.eup %2524 }
 0x315   :  { %v2527_v27 = vpop.eup %2526  ;;  %v626_v30 = vadd.f32 1.0, %v2525_v11 }
 0x316   :  { %v632_v40 = vadd.f32 1.0, %v2527_v27  ;;  %v2529_v46 = vpop.eup %2528 }
 0x317   :  { %2532 = vrcp.f32 %v626_v30  ;;  %v2531_v50 = vpop.eup %2530  ;;  %v639_v52 = vadd.f32 1.0, %v2529_v46  ;;  %v654_v46 = vmul.f32 %v649_v25, %v3028_v31 }
 0x318   :  { %2534 = vrcp.f32 %v632_v40 }
 0x319   :  { %2536 = vrcp.f32 %v639_v52 }
 0x321   :  { %v2533_v24 = vpop.eup %2532 }
 0x322   :  { %v2535_v51 = vpop.eup %2534  ;;  %v643_v9 = vmul.f32 %v2533_v24, %v2531_v50 }
 0x323   :  { %v642_v16 = vmul.f32 %v2535_v51, %v3046_v34  ;;  %v2537_v56 = vpop.eup %2536  ;;  %v2746_v34 = vmov 3  }
 0x324   :  { %2502 = vset.pattern.permute.xlu1 %v2746_v34 }
 0x325   :  { %v3093_v12 = vadd.f32 %v643_v9, %v642_v16  ;;  %830 = vperm.xlu1 %2502, %v2978_v59   ;;  %v653_v16 = vmul.f32 %v649_v25, %v3036_v62 }
 0x327   :  { %2538 = vtanh.f32 %v3093_v12 }
 0x331   :  { %v2539_v61 = vpop.eup %2538 }
 0x332   :  { %v646_v63 = vmul.f32 %v2539_v61, %v2537_v56 }
 0x334   :  { %720 = vmatmul.mubr.f32.vlgmr.msra.gmra.mrb[4].mxu1 %v646_v63  ;;  %791 = vmatmul.mubr.f32.vlgmr.msra.gmra.mrb[6].mxu0 %v646_v63 }
 0x335   :  { %2138 = vmatpush1.bf16.msra.mxu1 %v2874_v18  ;;  %2170 = vmatpush1.bf16.msra.mxu0 %v2885_v28 }
 0x336   :  { %2140 = vmatprep.subr.bf16.mxu1 %v2877_v22  ;;  %2172 = vmatprep.subr.bf16.mxu0 %v2891_v33 }
 0x337   :  { %901 = vmatprep.mubr.f32.mxu1 %v2741_v1  ;;  %972 = vmatprep.mubr.f32.mxu0 %v2741_v1 }
 0x339   :  { %2142 = vmatpush1.bf16.msra.mxu1 %v2888_v29  ;;  %2174 = vmatpush1.bf16.msra.mxu0 %v2900_v43 }
 0x33a   :  { %2144 = vmatprep.subr.bf16.mxu1 %v2893_v35  ;;  %2176 = vmatprep.subr.bf16.mxu0 %v2906_v48 }
 0x33d   :  { %2146 = vmatpush1.bf16.msra.mxu1 %v2897_v41  ;;  %2178 = vmatpush1.bf16.msra.mxu0 %v2913_v55 }
 0x33e   :  { %2148 = vmatprep.subr.bf16.mxu1 %v2903_v45  ;;  %2180 = vmatprep.subr.bf16.mxu0 %v2919_v60 }
 0x341   :  { %2150 = vmatpush1.bf16.msra.mxu1 %v2910_v54  ;;  %2182 = vmatpush1.bf16.msra.mxu0 %v2925_v5 }
 0x342   :  { %2152 = vmatprep.subr.bf16.mxu1 %v2916_v57  ;;  %2184 = vmatprep.subr.bf16.mxu0 %v2931_v10 }
 0x345   :  { %2154 = vmatpush1.bf16.msra.mxu1 %v2922_v4  ;;  %2186 = vmatpush1.bf16.msra.mxu0 %v2937_v20 }
 0x346   :  { %2156 = vmatprep.subr.bf16.mxu1 %v2928_v7  ;;  %2188 = vmatprep.subr.bf16.mxu0 %v2943_v26 }
 0x349   :  { %2158 = vmatpush1.bf16.msra.mxu1 %v2934_v19  ;;  %2190 = vmatpush1.bf16.msra.mxu0 %v2949_v37 }
 0x34a   :  { %2160 = vmatprep.subr.bf16.mxu1 %v2940_v23  ;;  %2192 = vmatprep.subr.bf16.mxu0 %v2955_v39 }
 0x34d   :  { %2162 = vmatpush1.bf16.msra.mxu1 %v2946_v36  ;;  %2194 = vmatpush1.bf16.msra.mxu0 %v2959_v47 }
 0x34e   :  { %2164 = vmatprep.subr.bf16.mxu1 %v2952_v38  ;;  %2196 = vmatprep.subr.bf16.mxu0 %v2963_v49 }
 0x351   :  { %2166 = vmatpush1.bf16.msra.mxu1 %v2967_v53  ;;  %2198 = vmatpush1.bf16.msra.mxu0 %v2969_v58 }
 0x352   :  { %2200 = vmatprep.subr.bf16.mxu1 %v2869_v13  ;;  %2232 = vmatprep.subr.bf16.mxu0 %v2872_v17 }
 0x407   :  { %v721_v3 = vpop.f32.mrb[4].mxu1  ;;  %v792_v8 = vpop.f32.mrb[6].mxu0 }
 0x408   :  { %v797_v11 = vadd.f32 %v721_v3, %v651_v42  ;;  %v723_v27 = vpop.f32.mrb[5].mxu1  ;;  %v794_v30 = vpop.f32.mrb[7].mxu0  ;;  %v799_v61 = vadd.f32 %v792_v8, %v653_v16 }
 0x409   :  { %v798_v40 = vadd.f32 %v723_v27, %v652_v2  ;;  %v800_v52 = vadd.f32 %v794_v30, %v654_v46  ;;  %v831_v16 = vpop.permute.xlu1 %830 }
 0x40a   :  { %v801_v50 = vadd.f32 %v797_v11, %v3030_v32  ;;  %v803_v34 = vadd.f32 %v799_v61, %v3043_v14  ;;  %v834_v61 = vmul.f32 %v831_v16, %v3021_v21 }
 0x40b   :  { %v802_v24 = vadd.f32 %v798_v40, %v3032_v44  ;;  %v804_v56 = vadd.f32 %v800_v52, %v3039_v6 }
 0x40c   :  { %v1849_v51 = vmul.f32 -1.442695, %v801_v50 }
 0x40d   :  { %v1850_v9 = vmul.f32 -1.442695, %v802_v24  ;;  %v1851_v63 = vmul.f32 -1.442695, %v804_v56  ;;  %v833_v56 = vmul.f32 %v831_v16, %v3019_v15 }
 0x40e   :  { %2540 = vpow2.f32 %v1849_v51 }
 0x40f   :  { %2542 = vpow2.f32 %v1850_v9 }
 0x410   :  { %2544 = vpow2.f32 %v1851_v63 }
 0x411   :  { %2546 = vtanh.f32 %v803_v34 }
 0x418   :  { %v2541_v42 = vpop.eup %2540 }
 0x419   :  { %v2543_v2 = vpop.eup %2542  ;;  %v808_v3 = vadd.f32 1.0, %v2541_v42 }
 0x41a   :  { %v814_v11 = vadd.f32 1.0, %v2543_v2  ;;  %v2545_v27 = vpop.eup %2544 }
 0x41b   :  { %2548 = vrcp.f32 %v808_v3  ;;  %v2547_v30 = vpop.eup %2546  ;;  %v821_v50 = vadd.f32 1.0, %v2545_v27  ;;  %v836_v27 = vmul.f32 %v831_v16, %v3028_v31 }
 0x41c   :  { %2550 = vrcp.f32 %v814_v11 }
 0x41d   :  { %2552 = vrcp.f32 %v821_v50 }
 0x425   :  { %v2549_v40 = vpop.eup %2548 }
 0x426   :  { %v2551_v46 = vpop.eup %2550  ;;  %v825_v25 = vmul.f32 %v2549_v40, %v2547_v30 }
 0x427   :  { %v824_v24 = vmul.f32 %v2551_v46, %v3093_v12  ;;  %v2553_v51 = vpop.eup %2552  ;;  %v2747_v12 = vmov 4  }
 0x428   :  { %2503 = vset.pattern.permute.xlu1 %v2747_v12 }
 0x429   :  { %v3140_v8 = vadd.f32 %v825_v25, %v824_v24  ;;  %1012 = vperm.xlu1 %2503, %v2978_v59   ;;  %v835_v24 = vmul.f32 %v831_v16, %v3036_v62 }
 0x42b   :  { %2554 = vtanh.f32 %v3140_v8 }
 0x435   :  { %v2555_v9 = vpop.eup %2554 }
 0x436   :  { %v828_v52 = vmul.f32 %v2555_v9, %v2553_v51 }
 0x438   :  { %902 = vmatmul.mubr.f32.vlgmr.msra.gmra.mrb[6].mxu1 %v828_v52  ;;  %973 = vmatmul.mubr.f32.vlgmr.msra.gmra.mrb[8].mxu0 %v828_v52 }
 0x439   :  { %2202 = vmatpush1.bf16.msra.mxu1 %v2874_v18  ;;  %2234 = vmatpush1.bf16.msra.mxu0 %v2885_v28 }
 0x43a   :  { %2204 = vmatprep.subr.bf16.mxu1 %v2877_v22  ;;  %2236 = vmatprep.subr.bf16.mxu0 %v2891_v33 }
 0x43b   :  { %1083 = vmatprep.mubr.f32.mxu1 %v2741_v1  ;;  %1154 = vmatprep.mubr.f32.mxu0 %v2741_v1 }
 0x43d   :  { %2206 = vmatpush1.bf16.msra.mxu1 %v2888_v29  ;;  %2238 = vmatpush1.bf16.msra.mxu0 %v2900_v43 }
 0x43e   :  { %2208 = vmatprep.subr.bf16.mxu1 %v2893_v35  ;;  %2240 = vmatprep.subr.bf16.mxu0 %v2906_v48 }
 0x441   :  { %2210 = vmatpush1.bf16.msra.mxu1 %v2897_v41  ;;  %2242 = vmatpush1.bf16.msra.mxu0 %v2913_v55 }
 0x442   :  { %2212 = vmatprep.subr.bf16.mxu1 %v2903_v45  ;;  %2244 = vmatprep.subr.bf16.mxu0 %v2919_v60 }
 0x445   :  { %2214 = vmatpush1.bf16.msra.mxu1 %v2910_v54  ;;  %2246 = vmatpush1.bf16.msra.mxu0 %v2925_v5 }
 0x446   :  { %2216 = vmatprep.subr.bf16.mxu1 %v2916_v57  ;;  %2248 = vmatprep.subr.bf16.mxu0 %v2931_v10 }
 0x449   :  { %2218 = vmatpush1.bf16.msra.mxu1 %v2922_v4  ;;  %2250 = vmatpush1.bf16.msra.mxu0 %v2937_v20 }
 0x44a   :  { %2220 = vmatprep.subr.bf16.mxu1 %v2928_v7  ;;  %2252 = vmatprep.subr.bf16.mxu0 %v2943_v26 }
 0x44d   :  { %2222 = vmatpush1.bf16.msra.mxu1 %v2934_v19  ;;  %2254 = vmatpush1.bf16.msra.mxu0 %v2949_v37 }
 0x44e   :  { %2224 = vmatprep.subr.bf16.mxu1 %v2940_v23  ;;  %2256 = vmatprep.subr.bf16.mxu0 %v2955_v39 }
 0x451   :  { %2226 = vmatpush1.bf16.msra.mxu1 %v2946_v36  ;;  %2258 = vmatpush1.bf16.msra.mxu0 %v2959_v47 }
 0x452   :  { %2228 = vmatprep.subr.bf16.mxu1 %v2952_v38  ;;  %2260 = vmatprep.subr.bf16.mxu0 %v2963_v49 }
 0x455   :  { %2230 = vmatpush1.bf16.msra.mxu1 %v2967_v53  ;;  %2262 = vmatpush1.bf16.msra.mxu0 %v2969_v58 }
 0x456   :  { %2264 = vmatprep.subr.bf16.mxu1 %v2869_v13  ;;  %2296 = vmatprep.subr.bf16.mxu0 %v2872_v17 }
 0x50b   :  { %v903_v63 = vpop.f32.mrb[6].mxu1  ;;  %v974_v34 = vpop.f32.mrb[8].mxu0 }
 0x50c   :  { %v979_v42 = vadd.f32 %v903_v63, %v833_v56  ;;  %v905_v2 = vpop.f32.mrb[7].mxu1  ;;  %v976_v3 = vpop.f32.mrb[9].mxu0  ;;  %v981_v9 = vadd.f32 %v974_v34, %v835_v24 }
 0x50d   :  { %v980_v11 = vadd.f32 %v905_v2, %v834_v61  ;;  %v982_v50 = vadd.f32 %v976_v3, %v836_v27  ;;  %v1013_v24 = vpop.permute.xlu1 %1012 }
 0x50e   :  { %v983_v30 = vadd.f32 %v979_v42, %v3030_v32  ;;  %v985_v12 = vadd.f32 %v981_v9, %v3043_v14  ;;  %v1016_v9 = vmul.f32 %v1013_v24, %v3021_v21 }
 0x50f   :  { %v984_v40 = vadd.f32 %v980_v11, %v3032_v44  ;;  %v986_v51 = vadd.f32 %v982_v50, %v3039_v6 }
 0x510   :  { %v1852_v46 = vmul.f32 -1.442695, %v983_v30 }
 0x511   :  { %v1853_v25 = vmul.f32 -1.442695, %v984_v40  ;;  %v1854_v52 = vmul.f32 -1.442695, %v986_v51  ;;  %v1015_v51 = vmul.f32 %v1013_v24, %v3019_v15 }
 0x512   :  { %2556 = vpow2.f32 %v1852_v46 }
 0x513   :  { %2558 = vpow2.f32 %v1853_v25 }
 0x514   :  { %2560 = vpow2.f32 %v1854_v52 }
 0x515   :  { %2562 = vtanh.f32 %v985_v12 }
 0x51c   :  { %v2557_v56 = vpop.eup %2556 }
 0x51d   :  { %v2559_v61 = vpop.eup %2558  ;;  %v990_v63 = vadd.f32 1.0, %v2557_v56 }
 0x51e   :  { %v996_v42 = vadd.f32 1.0, %v2559_v61  ;;  %v2561_v2 = vpop.eup %2560 }
 0x51f   :  { %2564 = vrcp.f32 %v990_v63  ;;  %v2563_v3 = vpop.eup %2562  ;;  %v1003_v30 = vadd.f32 1.0, %v2561_v2  ;;  %v1018_v2 = vmul.f32 %v1013_v24, %v3028_v31 }
 0x520   :  { %2566 = vrcp.f32 %v996_v42 }
 0x521   :  { %2568 = vrcp.f32 %v1003_v30 }
 0x529   :  { %v2565_v11 = vpop.eup %2564 }
 0x52a   :  { %v2567_v27 = vpop.eup %2566  ;;  %v1007_v16 = vmul.f32 %v2565_v11, %v2563_v3 }
 0x52b   :  { %v1006_v40 = vmul.f32 %v2567_v27, %v3140_v8  ;;  %v2569_v46 = vpop.eup %2568  ;;  %v2748_v8 = vmov 5  }
 0x52c   :  { %2504 = vset.pattern.permute.xlu0 %v2748_v8 }
 0x52d   :  { %v3187_v34 = vadd.f32 %v1007_v16, %v1006_v40  ;;  %1194 = vperm.xlu0 %2504, %v2978_v59   ;;  %v1017_v40 = vmul.f32 %v1013_v24, %v3036_v62 }
 0x52f   :  { %2570 = vtanh.f32 %v3187_v34 }
 0x539   :  { %v2571_v25 = vpop.eup %2570 }
 0x53a   :  { %v1010_v50 = vmul.f32 %v2571_v25, %v2569_v46 }
 0x53c   :  { %1084 = vmatmul.mubr.f32.vlgmr.msra.gmra.mrb[8].mxu1 %v1010_v50  ;;  %1155 = vmatmul.mubr.f32.vlgmr.msra.gmra.mrb[10].mxu0 %v1010_v50 }
 0x53d   :  { %2266 = vmatpush1.bf16.msra.mxu1 %v2874_v18  ;;  %2298 = vmatpush1.bf16.msra.mxu0 %v2885_v28 }
 0x53e   :  { %2268 = vmatprep.subr.bf16.mxu1 %v2877_v22  ;;  %2300 = vmatprep.subr.bf16.mxu0 %v2891_v33 }
 0x53f   :  { %1265 = vmatprep.mubr.f32.mxu1 %v2741_v1  ;;  %1336 = vmatprep.mubr.f32.mxu0 %v2741_v1 }
 0x541   :  { %2270 = vmatpush1.bf16.msra.mxu1 %v2888_v29  ;;  %2302 = vmatpush1.bf16.msra.mxu0 %v2900_v43 }
 0x542   :  { %2272 = vmatprep.subr.bf16.mxu1 %v2893_v35  ;;  %2304 = vmatprep.subr.bf16.mxu0 %v2906_v48 }
 0x545   :  { %2274 = vmatpush1.bf16.msra.mxu1 %v2897_v41  ;;  %2306 = vmatpush1.bf16.msra.mxu0 %v2913_v55 }
 0x546   :  { %2276 = vmatprep.subr.bf16.mxu1 %v2903_v45  ;;  %2308 = vmatprep.subr.bf16.mxu0 %v2919_v60 }
 0x549   :  { %2278 = vmatpush1.bf16.msra.mxu1 %v2910_v54  ;;  %2310 = vmatpush1.bf16.msra.mxu0 %v2925_v5 }
 0x54a   :  { %2280 = vmatprep.subr.bf16.mxu1 %v2916_v57  ;;  %2312 = vmatprep.subr.bf16.mxu0 %v2931_v10 }
 0x54d   :  { %2282 = vmatpush1.bf16.msra.mxu1 %v2922_v4  ;;  %2314 = vmatpush1.bf16.msra.mxu0 %v2937_v20 }
 0x54e   :  { %2284 = vmatprep.subr.bf16.mxu1 %v2928_v7  ;;  %2316 = vmatprep.subr.bf16.mxu0 %v2943_v26 }
 0x551   :  { %2286 = vmatpush1.bf16.msra.mxu1 %v2934_v19  ;;  %2318 = vmatpush1.bf16.msra.mxu0 %v2949_v37 }
 0x552   :  { %2288 = vmatprep.subr.bf16.mxu1 %v2940_v23  ;;  %2320 = vmatprep.subr.bf16.mxu0 %v2955_v39 }
 0x555   :  { %2290 = vmatpush1.bf16.msra.mxu1 %v2946_v36  ;;  %2322 = vmatpush1.bf16.msra.mxu0 %v2959_v47 }
 0x556   :  { %2292 = vmatprep.subr.bf16.mxu1 %v2952_v38  ;;  %2324 = vmatprep.subr.bf16.mxu0 %v2963_v49 }
 0x559   :  { %2294 = vmatpush1.bf16.msra.mxu1 %v2967_v53  ;;  %2326 = vmatpush1.bf16.msra.mxu0 %v2969_v58 }
 0x55a   :  { %2328 = vmatprep.subr.bf16.mxu1 %v2869_v13  ;;  %2360 = vmatprep.subr.bf16.mxu0 %v2872_v17 }
 0x60f   :  { %v1085_v52 = vpop.f32.mrb[8].mxu1  ;;  %v1156_v12 = vpop.f32.mrb[10].mxu0 }
 0x610   :  { %v1161_v56 = vadd.f32 %v1085_v52, %v1015_v51  ;;  %v1087_v61 = vpop.f32.mrb[9].mxu1  ;;  %v1158_v63 = vpop.f32.mrb[11].mxu0  ;;  %v1163_v25 = vadd.f32 %v1156_v12, %v1017_v40 }
 0x611   :  { %v1162_v42 = vadd.f32 %v1087_v61, %v1016_v9  ;;  %v1164_v30 = vadd.f32 %v1158_v63, %v1018_v2  ;;  %v1195_v40 = vpop.permute.xlu0 %1194 }
 0x612   :  { %v1165_v3 = vadd.f32 %v1161_v56, %v3030_v32  ;;  %v1167_v8 = vadd.f32 %v1163_v25, %v3043_v14  ;;  %v1198_v25 = vmul.f32 %v1195_v40, %v3021_v21 }
 0x613   :  { %v1166_v11 = vadd.f32 %v1162_v42, %v3032_v44  ;;  %v1168_v46 = vadd.f32 %v1164_v30, %v3039_v6 }
 0x614   :  { %v1855_v27 = vmul.f32 -1.442695, %v1165_v3 }
 0x615   :  { %v1856_v16 = vmul.f32 -1.442695, %v1166_v11  ;;  %v1857_v50 = vmul.f32 -1.442695, %v1168_v46  ;;  %v1197_v46 = vmul.f32 %v1195_v40, %v3019_v15 }
 0x616   :  { %2572 = vpow2.f32 %v1855_v27 }
 0x617   :  { %2574 = vpow2.f32 %v1856_v16 }
 0x618   :  { %2576 = vpow2.f32 %v1857_v50 }
 0x619   :  { %2578 = vtanh.f32 %v1167_v8 }
 0x620   :  { %v2573_v51 = vpop.eup %2572 }
 0x621   :  { %v2575_v9 = vpop.eup %2574  ;;  %v1172_v52 = vadd.f32 1.0, %v2573_v51 }
 0x622   :  { %v1178_v56 = vadd.f32 1.0, %v2575_v9  ;;  %v2577_v61 = vpop.eup %2576 }
 0x623   :  { %2580 = vrcp.f32 %v1172_v52  ;;  %v2579_v63 = vpop.eup %2578  ;;  %v1185_v3 = vadd.f32 1.0, %v2577_v61  ;;  %v1200_v61 = vmul.f32 %v1195_v40, %v3028_v31 }
 0x624   :  { %2582 = vrcp.f32 %v1178_v56 }
 0x625   :  { %2584 = vrcp.f32 %v1185_v3 }
 0x62d   :  { %v2581_v42 = vpop.eup %2580 }
 0x62e   :  { %v2583_v2 = vpop.eup %2582  ;;  %v1189_v24 = vmul.f32 %v2581_v42, %v2579_v63 }
 0x62f   :  { %v1188_v11 = vmul.f32 %v2583_v2, %v3187_v34  ;;  %v2585_v27 = vpop.eup %2584  ;;  %v2749_v34 = vmov 6   ;;  %v1199_v2 = vmul.f32 %v1195_v40, %v3036_v62 }
 0x630   :  { %2505 = vset.pattern.permute.xlu1 %v2749_v34 }
 0x631   :  { %v3234_v12 = vadd.f32 %v1189_v24, %v1188_v11  ;;  %1376 = vperm.xlu1 %2505, %v2978_v59  }
 0x633   :  { %2586 = vtanh.f32 %v3234_v12 }
 0x63d   :  { %v2587_v16 = vpop.eup %2586 }
 0x63e   :  { %v1192_v30 = vmul.f32 %v2587_v16, %v2585_v27 }
 0x640   :  { %1266 = vmatmul.mubr.f32.vlgmr.msra.gmra.mrb[10].mxu1 %v1192_v30  ;;  %1337 = vmatmul.mubr.f32.vlgmr.msra.gmra.mrb[12].mxu0 %v1192_v30 }
 0x641   :  { %2330 = vmatpush1.bf16.msra.mxu1 %v2874_v18  ;;  %2362 = vmatpush1.bf16.msra.mxu0 %v2885_v28 }
 0x642   :  { %2332 = vmatprep.subr.bf16.mxu1 %v2877_v22  ;;  %2364 = vmatprep.subr.bf16.mxu0 %v2891_v33 }
 0x643   :  { %1447 = vmatprep.mubr.f32.mxu1 %v2741_v1  ;;  %1518 = vmatprep.mubr.f32.mxu0 %v2741_v1 }
 0x645   :  { %2334 = vmatpush1.bf16.msra.mxu1 %v2888_v29  ;;  %2366 = vmatpush1.bf16.msra.mxu0 %v2900_v43 }
 0x646   :  { %2336 = vmatprep.subr.bf16.mxu1 %v2893_v35  ;;  %2368 = vmatprep.subr.bf16.mxu0 %v2906_v48 }
 0x649   :  { %2338 = vmatpush1.bf16.msra.mxu1 %v2897_v41  ;;  %2370 = vmatpush1.bf16.msra.mxu0 %v2913_v55 }
 0x64a   :  { %2340 = vmatprep.subr.bf16.mxu1 %v2903_v45  ;;  %2372 = vmatprep.subr.bf16.mxu0 %v2919_v60 }
 0x64d   :  { %2342 = vmatpush1.bf16.msra.mxu1 %v2910_v54  ;;  %2374 = vmatpush1.bf16.msra.mxu0 %v2925_v5 }
 0x64e   :  { %2344 = vmatprep.subr.bf16.mxu1 %v2916_v57  ;;  %2376 = vmatprep.subr.bf16.mxu0 %v2931_v10 }
 0x651   :  { %2346 = vmatpush1.bf16.msra.mxu1 %v2922_v4  ;;  %2378 = vmatpush1.bf16.msra.mxu0 %v2937_v20 }
 0x652   :  { %2348 = vmatprep.subr.bf16.mxu1 %v2928_v7  ;;  %2380 = vmatprep.subr.bf16.mxu0 %v2943_v26 }
 0x655   :  { %2350 = vmatpush1.bf16.msra.mxu1 %v2934_v19  ;;  %2382 = vmatpush1.bf16.msra.mxu0 %v2949_v37 }
 0x656   :  { %2352 = vmatprep.subr.bf16.mxu1 %v2940_v23  ;;  %2384 = vmatprep.subr.bf16.mxu0 %v2955_v39 }
 0x659   :  { %2354 = vmatpush1.bf16.msra.mxu1 %v2946_v36  ;;  %2386 = vmatpush1.bf16.msra.mxu0 %v2959_v47 }
 0x65a   :  { %2356 = vmatprep.subr.bf16.mxu1 %v2952_v38  ;;  %2388 = vmatprep.subr.bf16.mxu0 %v2963_v49 }
 0x65d   :  { %2358 = vmatpush1.bf16.msra.mxu1 %v2967_v53  ;;  %2390 = vmatpush1.bf16.msra.mxu0 %v2969_v58 }
 0x65e   :  { %2392 = vmatprep.subr.bf16.mxu1 %v2869_v13  ;;  %2424 = vmatprep.subr.bf16.mxu0 %v2872_v17 }
 0x713   :  { %v1267_v50 = vpop.f32.mrb[10].mxu1  ;;  %v1338_v8 = vpop.f32.mrb[12].mxu0 }
 0x714   :  { %v1343_v51 = vadd.f32 %v1267_v50, %v1197_v46  ;;  %v1269_v9 = vpop.f32.mrb[11].mxu1  ;;  %v1340_v52 = vpop.f32.mrb[13].mxu0  ;;  %v1345_v3 = vadd.f32 %v1338_v8, %v1199_v2 }
 0x715   :  { %v1344_v56 = vadd.f32 %v1269_v9, %v1198_v25  ;;  %v1346_v59 = vadd.f32 %v1340_v52, %v1200_v61 }
 0x716   :  { %v1347_v13 = vadd.f32 %v1343_v51, %v3030_v32  ;;  %v1349_v27 = vadd.f32 %v1345_v3, %v3043_v14 }
 0x717   :  { %v1348_v17 = vadd.f32 %v1344_v56, %v3032_v44  ;;  %v1350_v24 = vadd.f32 %v1346_v59, %v3039_v6 }
 0x718   :  { %v1858_v63 = vmul.f32 -1.442695, %v1347_v13 }
 0x719   :  { %v1859_v42 = vmul.f32 -1.442695, %v1348_v17  ;;  %v1860_v11 = vmul.f32 -1.442695, %v1350_v24 }
 0x71a   :  { %2588 = vpow2.f32 %v1858_v63 }
 0x71b   :  { %2590 = vpow2.f32 %v1859_v42 }
 0x71c   :  { %2592 = vpow2.f32 %v1860_v11  ;;  %v1739_v11 = vld [vmem:[#allocation6] sm:$0xff] }
 0x71d   :  { %2594 = vtanh.f32 %v1349_v27  ;;  %v1740_v27 = vld [vmem:[#allocation6 + $0x8] sm:$0xff] }
 0x724   :  { %v2589_v16 = vpop.eup %2588 }
 0x725   :  { %v2591_v30 = vpop.eup %2590  ;;  %v1354_v34 = vadd.f32 1.0, %v2589_v16  ;;  %v2456_v16 = vpack.c.bf16 %v1740_v27, %v1739_v11 }
 0x726   :  { %v1360_v46 = vadd.f32 1.0, %v2591_v30  ;;  %v2593_v25 = vpop.eup %2592  ;;  %v1741_v30 = vld [vmem:[#allocation6 + $0x10] sm:$0xff] }
 0x727   :  { %2596 = vrcp.f32 %v1354_v34  ;;  %v2595_v50 = vpop.eup %2594  ;;  %v1367_v52 = vadd.f32 1.0, %v2593_v25  ;;  %v1742_v34 = vld [vmem:[#allocation6 + $0x18] sm:$0xff]  ;;  %v1743_v25 = vld [vmem:[#allocation6 + $0x20] sm:$0xff] }
 0x728   :  { %2598 = vrcp.f32 %v1360_v46  ;;  %v2459_v46 = vpack.c.bf16 %v1742_v34, %v1741_v30 }
 0x729   :  { %2600 = vrcp.f32 %v1367_v52  ;;  %v1747_v52 = vld [vmem:[#allocation6 + $0x40] sm:$0xff] }
 0x731   :  { %v2597_v51 = vpop.eup %2596 }
 0x732   :  { %v2599_v9 = vpop.eup %2598  ;;  %v1371_v40 = vmul.f32 %v2597_v51, %v2595_v50  ;;  %v1744_v50 = vld [vmem:[#allocation6 + $0x28] sm:$0xff] }
 0x733   :  { %v1370_v56 = vmul.f32 %v2599_v9, %v3234_v12  ;;  %v2601_v61 = vpop.eup %2600  ;;  %v2462_v51 = vpack.c.bf16 %v1744_v50, %v1743_v25  ;;  %v1745_v9 = vld [vmem:[#allocation6 + $0x30] sm:$0xff] }
 0x735   :  { %v3281_v8 = vadd.f32 %v1371_v40, %v1370_v56  ;;  %v1748_v56 = vld [vmem:[#allocation6 + $0x48] sm:$0xff] }
 0x737   :  { %2602 = vtanh.f32 %v3281_v8 }
 0x741   :  { %v2603_v13 = vpop.eup %2602 }
 0x742   :  { %v1374_v17 = vmul.f32 %v2603_v13, %v2601_v61  ;;  %v2468_v61 = vpack.c.bf16 %v1748_v56, %v1747_v52  ;;  %v1750_v13 = vld [vmem:[#allocation6 + $0x58] sm:$0xff] }
 0x744   :  { %1448 = vmatmul.mubr.f32.vlgmr.msra.gmra.mrb[12].mxu1 %v1374_v17  ;;  %1519 = vmatmul.mubr.f32.vlgmr.msra.gmra.mrb[14].mxu0 %v1374_v17 }
 0x745   :  { %2394 = vmatpush1.bf16.msra.mxu1 %v2874_v18  ;;  %2426 = vmatpush1.bf16.msra.mxu0 %v2885_v28  ;;  %v2750_v18 = vmov 7   ;;  %v1377_v28 = vpop.permute.xlu1 %1376 }
 0x746   :  { %2396 = vmatprep.subr.bf16.mxu1 %v2877_v22  ;;  %2428 = vmatprep.subr.bf16.mxu0 %v2891_v33  ;;  %v2636_v22 = vld [vmem:[%s3353_s0] sm:$0xff]  ;;  %v1380_v33 = vmul.f32 %v1377_v28, %v3021_v21 }
 0x747   :  { %1629 = vmatprep.mubr.f32.mxu1 %v2741_v1  ;;  %1700 = vmatprep.mubr.f32.mxu0 %v2741_v1 }
 0x748   :  { %2506 = vset.pattern.permute.xlu1 %v2750_v18  ;;  %2507 = vset.pattern.permute.xlu0 %v2750_v18  ;;  %v1751_v18 = vld [vmem:[#allocation6 + $0x60] sm:$0xff] }
 0x749   :  { %2398 = vmatpush1.bf16.msra.mxu1 %v2888_v29  ;;  %2430 = vmatpush1.bf16.msra.mxu0 %v2900_v43  ;;  %v1379_v29 = vmul.f32 %v1377_v28, %v3019_v15 }
 0x74a   :  { %2400 = vmatprep.subr.bf16.mxu1 %v2893_v35  ;;  %2432 = vmatprep.subr.bf16.mxu0 %v2906_v48 }
 0x74b   :  { %1558 = vperm.xlu1 %2506, %v2636_v22   ;;  %v1752_v22 = vld [vmem:[#allocation6 + $0x68] sm:$0xff] }
 0x74d   :  { %2402 = vmatpush1.bf16.msra.mxu1 %v2897_v41  ;;  %2434 = vmatpush1.bf16.msra.mxu0 %v2913_v55  ;;  %v1382_v55 = vmul.f32 %v1377_v28, %v3028_v31 }
 0x74e   :  { %2404 = vmatprep.subr.bf16.mxu1 %v2903_v45  ;;  %2436 = vmatprep.subr.bf16.mxu0 %v2919_v60 }
 0x751   :  { %2406 = vmatpush1.bf16.msra.mxu1 %v2910_v54  ;;  %2438 = vmatpush1.bf16.msra.mxu0 %v2925_v5 }
 0x752   :  { %2408 = vmatprep.subr.bf16.mxu1 %v2916_v57  ;;  %2440 = vmatprep.subr.bf16.mxu0 %v2931_v10  ;;  %v1381_v10 = vmul.f32 %v1377_v28, %v3036_v62  ;;  %v2474_v28 = vpack.c.bf16 %v1752_v22, %v1751_v18 }
 0x755   :  { %2410 = vmatpush1.bf16.msra.mxu1 %v2922_v4  ;;  %2442 = vmatpush1.bf16.msra.mxu0 %v2937_v20 }
 0x756   :  { %2412 = vmatprep.subr.bf16.mxu1 %v2928_v7  ;;  %2444 = vmatprep.subr.bf16.mxu0 %v2943_v26 }
 0x759   :  { %2414 = vmatpush1.bf16.msra.mxu1 %v2934_v19  ;;  %2446 = vmatpush1.bf16.msra.mxu0 %v2949_v37 }
 0x75a   :  { %2416 = vmatprep.subr.bf16.mxu1 %v2940_v23  ;;  %2448 = vmatprep.subr.bf16.mxu0 %v2955_v39 }
 0x75d   :  { %2418 = vmatpush1.bf16.msra.mxu1 %v2946_v36  ;;  %2450 = vmatpush1.bf16.msra.mxu0 %v2959_v47 }
 0x75e   :  { %2420 = vmatprep.subr.bf16.mxu1 %v2952_v38  ;;  %2452 = vmatprep.subr.bf16.mxu0 %v2963_v49 }
 0x761   :  { %2422 = vmatpush1.bf16.msra.mxu1 %v2967_v53  ;;  %2454 = vmatpush1.bf16.msra.mxu0 %v2969_v58 }
 0x762   :  { %2455 = vmatprep.subr.bf16.mxu1 %v2739_v0 }
 0x817   :  { %v1449_v35 = vpop.f32.mrb[12].mxu1  ;;  %v1520_v41 = vpop.f32.mrb[14].mxu0 }
 0x818   :  { %v1525_v43 = vadd.f32 %v1449_v35, %v1379_v29  ;;  %v1451_v45 = vpop.f32.mrb[13].mxu1  ;;  %v1522_v48 = vpop.f32.mrb[15].mxu0  ;;  %v1527_v20 = vadd.f32 %v1520_v41, %v1381_v10  ;;  %v1753_v29 = vld [vmem:[#allocation6 + $0x70] sm:$0xff] }
 0x819   :  { %v1526_v54 = vadd.f32 %v1451_v45, %v1380_v33  ;;  %v1528_v7 = vadd.f32 %v1522_v48, %v1382_v55  ;;  %v1754_v33 = vld [vmem:[#allocation6 + $0x78] sm:$0xff]  ;;  %v1559_v41 = vpop.permute.xlu1 %1558 }
 0x81a   :  { %v1529_v57 = vadd.f32 %v1525_v43, %v3030_v32  ;;  %v1531_v26 = vadd.f32 %v1527_v20, %v3043_v14  ;;  %v2477_v35 = vpack.c.bf16 %v1754_v33, %v1753_v29  ;;  %v1561_v43 = vmul.f32 %v1559_v41, %v3019_v15 }
 0x81b   :  { %v1530_v60 = vadd.f32 %v1526_v54, %v3032_v44  ;;  %v1532_v19 = vadd.f32 %v1528_v7, %v3039_v6  ;;  %v1562_v45 = vmul.f32 %v1559_v41, %v3021_v21  ;;  %v1563_v15 = vmul.f32 %v1559_v41, %v3036_v62 }
 0x81c   :  { %v1861_v4 = vmul.f32 -1.442695, %v1529_v57 }
 0x81d   :  { %v1862_v5 = vmul.f32 -1.442695, %v1530_v60  ;;  %v1863_v23 = vmul.f32 -1.442695, %v1532_v19 }
 0x81e   :  { %2604 = vpow2.f32 %v1861_v4 }
 0x81f   :  { %2606 = vpow2.f32 %v1862_v5  ;;  %v1564_v5 = vmul.f32 %v1559_v41, %v3028_v31 }
 0x820   :  { %2608 = vpow2.f32 %v1863_v23 }
 0x821   :  { %2610 = vtanh.f32 %v1531_v26 }
 0x828   :  { %v2605_v36 = vpop.eup %2604 }
 0x829   :  { %v2607_v37 = vpop.eup %2606  ;;  %v1536_v38 = vadd.f32 1.0, %v2605_v36 }
 0x82a   :  { %v1542_v39 = vadd.f32 1.0, %v2607_v37  ;;  %v2609_v47 = vpop.eup %2608 }
 0x82b   :  { %2612 = vrcp.f32 %v1536_v38  ;;  %v2611_v49 = vpop.eup %2610  ;;  %v1549_v63 = vadd.f32 1.0, %v2609_v47 }
 0x82c   :  { %2614 = vrcp.f32 %v1542_v39 }
 0x82d   :  { %2616 = vrcp.f32 %v1549_v63 }
 0x835   :  { %v2613_v53 = vpop.eup %2612 }
 0x836   :  { %v2615_v58 = vpop.eup %2614  ;;  %v1553_v12 = vmul.f32 %v2613_v53, %v2611_v49 }
 0x837   :  { %v1552_v42 = vmul.f32 %v2615_v58, %v3281_v8  ;;  %v2617_v2 = vpop.eup %2616  ;;  %v1749_v8 = vld [vmem:[#allocation6 + $0x50] sm:$0xff] }
 0x838   :  { %v2471_v17 = vpack.c.bf16 %v1750_v13, %v1749_v8 }
 0x839   :  { %v3329_v59 = vadd.f32 %v1553_v12, %v1552_v42  ;;  %v1867_v42 = vld [vmem:[#allocation7] ss:$0 sm:$0xff] }
 0x83b   :  { %2618 = vtanh.f32 %v3329_v59 }
 0x845   :  { %v2619_v24 = vpop.eup %2618 }
 0x846   :  { %v1556_v3 = vmul.f32 %v2619_v24, %v2617_v2 }
 0x848   :  { %1630 = vmatmul.mubr.f32.vlgmr.msra.gmra.mrb[14].mxu1 %v1556_v3  ;;  %1701 = vmatmul.mubr.f32.vlgmr.msra.gmra.mrb[16].mxu0 %v1556_v3 }
 0x849   :  { %1933 = vmatprep.mubr.msk.f32.mxu1 %vm2740_vm0, %v2741_v1  ;;  %2457 = vmatpush3.bf16.msra.mxu1 %v2456_v16  ;;  %v1746_v1 = vld [vmem:[#allocation6 + $0x38] sm:$0xff] }
 0x84a   :  { %2458 = vmatprep.subr.bf16.mxu1 %v2739_v0  ;;  %v2465_v40 = vpack.c.bf16 %v1746_v1, %v1745_v9 }
 0x84d   :  { %2460 = vmatpush3.bf16.msra.mxu1 %v2459_v46 }
 0x84e   :  { %2461 = vmatprep.subr.bf16.mxu1 %v2739_v0 }
 0x851   :  { %2463 = vmatpush3.bf16.msra.mxu1 %v2462_v51 }
 0x852   :  { %2464 = vmatprep.subr.bf16.mxu1 %v2739_v0 }
 0x855   :  { %2466 = vmatpush3.bf16.msra.mxu1 %v2465_v40 }
 0x856   :  { %2467 = vmatprep.subr.bf16.mxu1 %v2739_v0 }
 0x859   :  { %2469 = vmatpush3.bf16.msra.mxu1 %v2468_v61 }
 0x85a   :  { %2470 = vmatprep.subr.bf16.mxu1 %v2739_v0 }
 0x85d   :  { %2472 = vmatpush3.bf16.msra.mxu1 %v2471_v17 }
 0x85e   :  { %2473 = vmatprep.subr.bf16.mxu1 %v2739_v0 }
 0x861   :  { %2475 = vmatpush3.bf16.msra.mxu1 %v2474_v28 }
 0x862   :  { %2476 = vmatprep.subr.bf16.mxu1 %v2739_v0 }
 0x865   :  { %2478 = vmatpush3.bf16.msra.mxu1 %v2477_v35 }
 0x91b   :  { %v1631_v48 = vpop.f32.mrb[14].mxu1  ;;  %v1702_v54 = vpop.f32.mrb[16].mxu0 }
 0x91c   :  { %v1707_v55 = vadd.f32 %v1631_v48, %v1561_v43  ;;  %v1633_v57 = vpop.f32.mrb[15].mxu1  ;;  %v1704_v60 = vpop.f32.mrb[17].mxu0  ;;  %v1709_v23 = vadd.f32 %v1702_v54, %v1563_v15 }
 0x91d   :  { %v1708_v4 = vadd.f32 %v1633_v57, %v1562_v45  ;;  %v1710_v20 = vadd.f32 %v1704_v60, %v1564_v5 }
 0x91e   :  { %v1711_v7 = vadd.f32 %v1707_v55, %v3030_v32  ;;  %v1713_v36 = vadd.f32 %v1709_v23, %v3043_v14 }
 0x91f   :  { %v1712_v10 = vadd.f32 %v1708_v4, %v3032_v44  ;;  %v1714_v21 = vadd.f32 %v1710_v20, %v3039_v6 }
 0x920   :  { %v1864_v19 = vmul.f32 -1.442695, %v1711_v7 }
 0x921   :  { %v1865_v0 = vmul.f32 -1.442695, %v1712_v10  ;;  %v1866_v26 = vmul.f32 -1.442695, %v1714_v21 }
 0x922   :  { %2620 = vpow2.f32 %v1864_v19 }
 0x923   :  { %2622 = vpow2.f32 %v1865_v0 }
 0x924   :  { %2624 = vpow2.f32 %v1866_v26 }
 0x925   :  { %2626 = vtanh.f32 %v1713_v36 }
 0x92c   :  { %v2621_v37 = vpop.eup %2620 }
 0x92d   :  { %v2623_v38 = vpop.eup %2622  ;;  %v1718_v31 = vadd.f32 1.0, %v2621_v37 }
 0x92e   :  { %v1724_v32 = vadd.f32 1.0, %v2623_v38  ;;  %v2625_v44 = vpop.eup %2624 }
 0x92f   :  { %2628 = vrcp.f32 %v1718_v31  ;;  %v2627_v39 = vpop.eup %2626  ;;  %v1731_v53 = vadd.f32 1.0, %v2625_v44 }
 0x930   :  { %2630 = vrcp.f32 %v1724_v32 }
 0x931   :  { %2632 = vrcp.f32 %v1731_v53 }
 0x939   :  { %v2629_v47 = vpop.eup %2628 }
 0x93a   :  { %v2631_v49 = vpop.eup %2630  ;;  %v1735_v62 = vmul.f32 %v2629_v47, %v2627_v39 }
 0x93b   :  { %v1734_v6 = vmul.f32 %v2631_v49, %v3329_v59  ;;  %v2633_v14 = vpop.eup %2632 }
 0x93d   :  { %v1736_v58 = vadd.f32 %v1735_v62, %v1734_v6 }
 0x93f   :  { %2634 = vtanh.f32 %v1736_v58 }
 0x949   :  { %v2635_v12 = vpop.eup %2634 }
 0x94a   :  { %v1738_v63 = vmul.f32 %v2635_v12, %v2633_v14 }
 0x94c   :  { %1934 = vmatmul.mubr.f32.vlgmr.msra.gmra.mrb[16].mxu1 %v1738_v63 }
 0xa1f   :  { %v1828_v2 = vpop.f32.mrb[16].mxu1 }
 0xa20   :  { %v1829_v24 = vadd.f32 %v1867_v42, %v1828_v2  ;;  %v1935_v3 = vpop.f32.mrb[17].mxu1 }
 0xa22   :  { %1832 = vst [vmem:[%s3362_s9] sm:$0xff] %v1829_v24 }
 0xa23   :  { %1837 = vsyncpa [#allocation3], 1 }
 0xa24   :  { %1838 = vsyncpa [#allocation5], 1 }
 0xa25   :  { %1839 = vsyncpa [#allocation8], 1 }

</bundles_post_ra>
